<compile_context>
chip_gen: v7x
topology: tpu7x:2x2x1
jax: 0.10.0
libtpu: 0.0.40
codegen_flags: <defaults>
</compile_context>

<pallas_src>
import functools

import numpy as np
import jax
import jax.numpy as jnp
from jax.experimental import pallas as pl
from jax.experimental.pallas import tpu as pltpu

LEAKY_SLOPE = 0.2
BN_EPS = 1e-5


def _leaky(y):
    return jnp.where(y >= 0, y, LEAKY_SLOPE * y)


# ---------------------------------------------------------------------------
# Kernel 1: upsample(x1) + [1x1 conv + BN + LReLU](x2) + zero-pad + concat
# ---------------------------------------------------------------------------
def _prepare_kernel(x1_ref, x2_ref, r_ref, ct_ref, w1_ref, b1_ref, o_ref, *,
                    c1, c2, co1, up_h, up_w, pad_t, pad_l):
    h2, w2 = o_ref.shape[2], o_ref.shape[3]

    # --- 1x1 conv + folded BN + LeakyReLU on x2 ----------------------------
    # Cout is tiny (4): a handful of VPU multiply-adds beats an MXU call.
    for o in range(co1):
        acc = w1_ref[o, 0] * x2_ref[0, 0]
        for ci in range(1, c2):
            acc = acc + w1_ref[o, ci] * x2_ref[0, ci]
        o_ref[0, o] = _leaky(acc + b1_ref[o]).astype(o_ref.dtype)

    # --- bilinear 2x upsample of x1 (resize-as-matmul, separable) ----------
    # up = R @ x[c] @ C^T writes the interleaved full-resolution plane
    # directly; no phase planes, no wrapper stack/reshape pass.
    r = r_ref[...]      # (2*H1, H1)
    ct = ct_ref[...]    # (W1, 2*W1)
    for c in range(c1):
        rows = jnp.dot(r, x1_ref[0, c], preferred_element_type=jnp.float32)
        up = jnp.dot(rows, ct, preferred_element_type=jnp.float32)
        if up_h != h2 or up_w != w2:
            # F.pad(x1, ...) with zeros up to x2's spatial size
            o_ref[0, co1 + c] = jnp.zeros((h2, w2), o_ref.dtype)
            o_ref[0, co1 + c, pad_t:pad_t + up_h, pad_l:pad_l + up_w] = (
                up.astype(o_ref.dtype))
        else:
            o_ref[0, co1 + c] = up.astype(o_ref.dtype)


def _bilinear_matrix(n):
    """(2n, n) 1-D interpolation matrix of nn.Upsample(scale_factor=2,
    mode='bilinear') with align_corners=False (half-pixel centers, clamp)."""
    m = np.zeros((2 * n, n), np.float32)
    for i in range(n):
        m[2 * i, max(i - 1, 0)] += 0.25
        m[2 * i, i] += 0.75
        m[2 * i + 1, i] += 0.75
        m[2 * i + 1, min(i + 1, n - 1)] += 0.25
    return m


def prepare_xcat(x1, x2, w1, b1):
    """x1: (N,C1,H1,W1), x2: (N,C2,H2,W2), w1: (Co1,C2) BN-folded, b1: (Co1,).
    Returns xcat = concat([conv1x1(x2), pad(up(x1))], channel) in bf16."""
    n, c1, h1, w1_sp = x1.shape
    _, c2, h2, w2_sp = x2.shape
    co1 = w1.shape[0]
    ccat = co1 + c1
    up_h, up_w = 2 * h1, 2 * w1_sp
    diff_y, diff_x = h2 - up_h, w2_sp - up_w
    assert diff_y >= 0 and diff_x >= 0

    r = jnp.asarray(_bilinear_matrix(h1))          # (2*H1, H1)
    ct = jnp.asarray(_bilinear_matrix(w1_sp).T)    # (W1, 2*W1)

    kern = functools.partial(_prepare_kernel, c1=c1, c2=c2, co1=co1,
                             up_h=up_h, up_w=up_w,
                             pad_t=diff_y // 2, pad_l=diff_x // 2)
    return pl.pallas_call(
        kern,
        out_shape=jax.ShapeDtypeStruct((n, ccat, h2, w2_sp), jnp.bfloat16),
        grid=(n,),
        in_specs=[
            pl.BlockSpec((1, c1, h1, w1_sp), lambda i: (i, 0, 0, 0)),
            pl.BlockSpec((1, c2, h2, w2_sp), lambda i: (i, 0, 0, 0)),
            pl.BlockSpec((2 * h1, h1), lambda i: (0, 0)),
            pl.BlockSpec((w1_sp, 2 * w1_sp), lambda i: (0, 0)),
            pl.BlockSpec(memory_space=pltpu.MemorySpace.SMEM),   # w1 scalars
            pl.BlockSpec(memory_space=pltpu.MemorySpace.SMEM),   # b1 scalars
        ],
        out_specs=pl.BlockSpec((1, ccat, h2, w2_sp), lambda i: (i, 0, 0, 0)),
        compiler_params=pltpu.CompilerParams(
            dimension_semantics=("parallel",)),
    )(x1, x2, r, ct, w1, b1)


# ---------------------------------------------------------------------------
# Kernel 2: fused DoubleConv = 2 x [3x3 reflect conv + folded BN + LeakyReLU]
# ---------------------------------------------------------------------------
def _double_conv_kernel(x_ref, m_ref, wa_ref, ba_ref, wb_ref, bb_ref, o_ref,
                        *, img_w):
    masks = m_ref[...]                  # (4, L) int32 border masks
    col0 = masks[0:1, :] != 0           # j == 0
    coll = masks[1:2, :] != 0           # j == W-1
    row0 = masks[2:3, :] != 0           # i == 0
    rowl = masks[3:4, :] != 0           # i == H-1
    w = img_w

    def sh(a, s):
        # roll along the flat spatial (lane) axis: result[:, p] = a[:, p - s].
        # Wrapped positions are always overwritten by the border fix below.
        return jnp.concatenate([a[:, -s:], a[:, :-s]], axis=1)

    def taps9(v):
        # 9 reflect-padded shifted copies of v (C, H*W), ordered (dy, dx)
        # row-major to match the (3, 3, Cin, Cout) weight flattening.
        left = jnp.where(col0, sh(v, -1), sh(v, 1))      # x[i, j-1]
        right = jnp.where(coll, sh(v, 1), sh(v, -1))     # x[i, j+1]
        cols = (left, v, right)                          # dx = -1, 0, +1
        ts = []
        for dy in (-1, 0, 1):
            for vv in cols:
                if dy == -1:
                    ts.append(jnp.where(row0, sh(vv, -w), sh(vv, w)))
                elif dy == 0:
                    ts.append(vv)
                else:
                    ts.append(jnp.where(rowl, sh(vv, w), sh(vv, -w)))
        return ts

    def conv_bn_lrelu(v, w9_ref, b_ref):
        ts = taps9(v)
        n_out, n_lane = w9_ref.shape[1], v.shape[1]
        acc = jnp.zeros((n_out, n_lane), jnp.float32)
        for t in range(9):  # 3x3 conv = 9 shifted (Cout,Cin)@(Cin,L) matmuls
            acc = acc + jnp.dot(w9_ref[t], ts[t].astype(jnp.bfloat16),
                                preferred_element_type=jnp.float32)
        return _leaky(acc + b_ref[...])

    x = x_ref[0].astype(jnp.float32)                       # (Cin, L)
    y = conv_bn_lrelu(x, wa_ref, ba_ref)
    y = conv_bn_lrelu(y, wb_ref, bb_ref)
    o_ref[0] = y.astype(o_ref.dtype)                       # lane-dense store


def _border_masks(h, w):
    idx = np.arange(h * w)
    col, row = idx % w, idx // w
    return jnp.asarray(np.stack([col == 0, col == w - 1,
                                 row == 0, row == h - 1]).astype(np.int32))


def double_conv(xf, wa9, ba, wb9, bb, h, w):
    """xf: (N, Cin, H*W) bf16 -> (N, Cout, H*W) f32."""
    n, cin, l = xf.shape
    cmid = wa9.shape[1]
    cout = wb9.shape[1]
    masks = _border_masks(h, w)
    kern = functools.partial(_double_conv_kernel, img_w=w)
    return pl.pallas_call(
        kern,
        out_shape=jax.ShapeDtypeStruct((n, cout, l), jnp.float32),
        grid=(n,),
        in_specs=[
            pl.BlockSpec((1, cin, l), lambda i: (i, 0, 0)),
            pl.BlockSpec((4, l), lambda i: (0, 0)),
            pl.BlockSpec((9, cmid, cin), lambda i: (0, 0, 0)),
            pl.BlockSpec((cmid, 1), lambda i: (0, 0)),
            pl.BlockSpec((9, cout, cmid), lambda i: (0, 0, 0)),
            pl.BlockSpec((cout, 1), lambda i: (0, 0)),
        ],
        out_specs=pl.BlockSpec((1, cout, l), lambda i: (i, 0, 0)),
        compiler_params=pltpu.CompilerParams(
            dimension_semantics=("parallel",)),
    )(xf, masks, wa9, ba, wb9, bb)


# ---------------------------------------------------------------------------
# Up module: params + forward
# ---------------------------------------------------------------------------
def fold_bn(conv_bias, gamma, beta, running_mean, running_var):
    scale = gamma / jnp.sqrt(running_var + BN_EPS)
    bias = (conv_bias - running_mean) * scale + beta
    return scale, bias


def init_up_params(key, in_channels, out_channels, conv1x1_ich, conv1x1_och=4):
    mid = out_channels                         # DoubleConv mid_channels=out
    cat_c = in_channels + conv1x1_och
    ks = jax.random.split(key, 12)

    def bn(kg, kb, c):
        gamma = 1.0 + 0.1 * jax.random.normal(kg, (c,), jnp.float32)
        beta = 0.1 * jax.random.normal(kb, (c,), jnp.float32)
        return (gamma, beta,
                jnp.zeros((c,), jnp.float32), jnp.ones((c,), jnp.float32))

    p = {}
    p['w_1x1'] = 0.1 * jax.random.normal(ks[0], (conv1x1_ich, conv1x1_och), jnp.float32)
    p['b_1x1'] = 0.1 * jax.random.normal(ks[1], (conv1x1_och,), jnp.float32)
    p['bn_1x1'] = bn(ks[2], ks[3], conv1x1_och)
    p['w_a'] = 0.1 * jax.random.normal(ks[4], (3, 3, cat_c, mid), jnp.float32)
    p['b_a'] = 0.1 * jax.random.normal(ks[5], (mid,), jnp.float32)
    p['bn_a'] = bn(ks[6], ks[7], mid)
    p['w_b'] = 0.1 * jax.random.normal(ks[8], (3, 3, mid, out_channels), jnp.float32)
    p['b_b'] = 0.1 * jax.random.normal(ks[9], (out_channels,), jnp.float32)
    p['bn_b'] = bn(ks[10], ks[11], out_channels)
    return p


def up_forward(params, x1_nchw, x2_nchw):
    x1 = x1_nchw.astype(jnp.float32)
    x2 = x2_nchw.astype(jnp.float32)
    n = x1.shape[0]
    h2, w2 = x2.shape[2], x2.shape[3]

    # --- fold eval-mode BN: per-channel scale into the weights -------------
    s1, b1 = fold_bn(params['b_1x1'], *params['bn_1x1'])
    w1 = (params['w_1x1'] * s1[None, :]).T                       # (Co1, C2)

    sa, ba = fold_bn(params['b_a'], *params['bn_a'])
    wa = params['w_a'] * sa                                      # (3,3,Ccat,mid)
    cmid = wa.shape[-1]
    wa9 = jnp.transpose(wa.reshape(9, -1, cmid), (0, 2, 1)).astype(jnp.bfloat16)

    sb, bb = fold_bn(params['b_b'], *params['bn_b'])
    wb = params['w_b'] * sb                                      # (3,3,mid,out)
    cout = wb.shape[-1]
    wb9 = jnp.transpose(wb.reshape(9, cmid, cout), (0, 2, 1)).astype(jnp.bfloat16)

    # --- kernel 1: upsample(x1) + conv1x1(x2) + pad + concat ---------------
    xcat = prepare_xcat(x1, x2, w1, b1)            # (N, Ccat, H2, W2) bf16
    xcat_flat = xcat.reshape(n, xcat.shape[1], h2 * w2)   # free metadata reshape

    # --- kernel 2: DoubleConv (both 3x3 reflect convs fused) ---------------
    out_flat = double_conv(xcat_flat, wa9,
                           ba.astype(jnp.float32).reshape(cmid, 1),
                           wb9, bb.astype(jnp.float32).reshape(cout, 1),
                           h2, w2)
    return out_flat.reshape(n, cout, h2, w2)       # already NCHW


if __name__ == "__main__":
    key = jax.random.PRNGKey(0)
    k1, k2, kp = jax.random.split(key, 3)

    N = 2
    in_channels, out_channels = 4, 8
    conv1x1_ich, conv1x1_och = 6, 4
    H1 = W1 = 8          # x1 spatial (upsampled 2x -> 16)
    H2 = W2 = 16         # x2 spatial

    x1 = jax.random.normal(k1, (N, in_channels, H1, W1), jnp.float32)
    x2 = jax.random.normal(k2, (N, conv1x1_ich, H2, W2), jnp.float32)
    params = init_up_params(kp, in_channels, out_channels,
                            conv1x1_ich, conv1x1_och)

    out = jax.jit(functools.partial(up_forward, params))(x1, x2)
    out = jax.block_until_ready(out)
    assert out.shape == (N, out_channels, H2, W2), out.shape
    assert bool(jnp.all(jnp.isfinite(out)))
    print("KERNEL_OK")
</pallas_src>

<mosaic_0001>
module attributes {stable_mosaic.version = 11 : i64} {
  func.func @_prepare_kernel(%arg0: i32, %arg1: memref<1x4x8x8xf32, #tpu.memory_space<vmem>>, %arg2: memref<1x6x16x16xf32, #tpu.memory_space<vmem>>, %arg3: memref<16x8xf32, #tpu.memory_space<vmem>>, %arg4: memref<8x16xf32, #tpu.memory_space<vmem>>, %arg5: memref<4x6xf32, #tpu.memory_space<smem>>, %arg6: memref<4xf32, #tpu.memory_space<smem>>, %arg7: memref<1x8x16x16xbf16, #tpu.memory_space<vmem>>) attributes {dimension_semantics = [#tpu.dimension_semantics<parallel>], iteration_bounds = array<i64: 2>, scalar_prefetch = 0 : i64, scratch_operands = 0 : i64, tpu.core_type = #tpu.core_type<tc>, window_params = [{transform_indices = @transform_0, window_bounds = array<i64: 1, 4, 8, 8>}, {transform_indices = @transform_1, window_bounds = array<i64: 1, 6, 16, 16>}, {pipeline_mode = #tpu.pipeline_mode<synchronous>, transform_indices = @transform_2, window_bounds = array<i64: 16, 8>}, {pipeline_mode = #tpu.pipeline_mode<synchronous>, transform_indices = @transform_3, window_bounds = array<i64: 8, 16>}, {transform_indices = @transform_4, window_bounds = array<i64: 4, 6>}, {transform_indices = @transform_5, window_bounds = array<i64: 4>}, {transform_indices = @transform_6, window_bounds = array<i64: 1, 8, 16, 16>}]} {
    %c0 = arith.constant 0 : index
    %c0_0 = arith.constant 0 : index
    %0 = memref.load %arg5[%c0, %c0_0] : memref<4x6xf32, #tpu.memory_space<smem>>
    %c0_1 = arith.constant 0 : index
    %c0_2 = arith.constant 0 : index
    %c0_3 = arith.constant 0 : index
    %c0_4 = arith.constant 0 : index
    %1 = vector.load %arg2[%c0_1, %c0_2, %c0_3, %c0_4] : memref<1x6x16x16xf32, #tpu.memory_space<vmem>>, vector<1x1x16x16xf32>
    %2 = vector.shape_cast %1 : vector<1x1x16x16xf32> to vector<16x16xf32>
    %3 = vector.broadcast %0 : f32 to vector<16x16xf32>
    %4 = arith.mulf %3, %2 : vector<16x16xf32>
    %c0_5 = arith.constant 0 : index
    %c1 = arith.constant 1 : index
    %5 = memref.load %arg5[%c0_5, %c1] : memref<4x6xf32, #tpu.memory_space<smem>>
    %c0_6 = arith.constant 0 : index
    %c1_7 = arith.constant 1 : index
    %c0_8 = arith.constant 0 : index
    %c0_9 = arith.constant 0 : index
    %6 = vector.load %arg2[%c0_6, %c1_7, %c0_8, %c0_9] : memref<1x6x16x16xf32, #tpu.memory_space<vmem>>, vector<1x1x16x16xf32>
    %7 = vector.shape_cast %6 : vector<1x1x16x16xf32> to vector<16x16xf32>
    %8 = vector.broadcast %5 : f32 to vector<16x16xf32>
    %9 = arith.mulf %8, %7 : vector<16x16xf32>
    %10 = arith.addf %4, %9 : vector<16x16xf32>
    %c0_10 = arith.constant 0 : index
    %c2 = arith.constant 2 : index
    %11 = memref.load %arg5[%c0_10, %c2] : memref<4x6xf32, #tpu.memory_space<smem>>
    %c0_11 = arith.constant 0 : index
    %c2_12 = arith.constant 2 : index
    %c0_13 = arith.constant 0 : index
    %c0_14 = arith.constant 0 : index
    %12 = vector.load %arg2[%c0_11, %c2_12, %c0_13, %c0_14] : memref<1x6x16x16xf32, #tpu.memory_space<vmem>>, vector<1x1x16x16xf32>
    %13 = vector.shape_cast %12 : vector<1x1x16x16xf32> to vector<16x16xf32>
    %14 = vector.broadcast %11 : f32 to vector<16x16xf32>
    %15 = arith.mulf %14, %13 : vector<16x16xf32>
    %16 = arith.addf %10, %15 : vector<16x16xf32>
    %c0_15 = arith.constant 0 : index
    %c3 = arith.constant 3 : index
    %17 = memref.load %arg5[%c0_15, %c3] : memref<4x6xf32, #tpu.memory_space<smem>>
    %c0_16 = arith.constant 0 : index
    %c3_17 = arith.constant 3 : index
    %c0_18 = arith.constant 0 : index
    %c0_19 = arith.constant 0 : index
    %18 = vector.load %arg2[%c0_16, %c3_17, %c0_18, %c0_19] : memref<1x6x16x16xf32, #tpu.memory_space<vmem>>, vector<1x1x16x16xf32>
    %19 = vector.shape_cast %18 : vector<1x1x16x16xf32> to vector<16x16xf32>
    %20 = vector.broadcast %17 : f32 to vector<16x16xf32>
    %21 = arith.mulf %20, %19 : vector<16x16xf32>
    %22 = arith.addf %16, %21 : vector<16x16xf32>
    %c0_20 = arith.constant 0 : index
    %c4 = arith.constant 4 : index
    %23 = memref.load %arg5[%c0_20, %c4] : memref<4x6xf32, #tpu.memory_space<smem>>
    %c0_21 = arith.constant 0 : index
    %c4_22 = arith.constant 4 : index
    %c0_23 = arith.constant 0 : index
    %c0_24 = arith.constant 0 : index
    %24 = vector.load %arg2[%c0_21, %c4_22, %c0_23, %c0_24] : memref<1x6x16x16xf32, #tpu.memory_space<vmem>>, vector<1x1x16x16xf32>
    %25 = vector.shape_cast %24 : vector<1x1x16x16xf32> to vector<16x16xf32>
    %26 = vector.broadcast %23 : f32 to vector<16x16xf32>
    %27 = arith.mulf %26, %25 : vector<16x16xf32>
    %28 = arith.addf %22, %27 : vector<16x16xf32>
    %c0_25 = arith.constant 0 : index
    %c5 = arith.constant 5 : index
    %29 = memref.load %arg5[%c0_25, %c5] : memref<4x6xf32, #tpu.memory_space<smem>>
    %c0_26 = arith.constant 0 : index
    %c5_27 = arith.constant 5 : index
    %c0_28 = arith.constant 0 : index
    %c0_29 = arith.constant 0 : index
    %30 = vector.load %arg2[%c0_26, %c5_27, %c0_28, %c0_29] : memref<1x6x16x16xf32, #tpu.memory_space<vmem>>, vector<1x1x16x16xf32>
    %31 = vector.shape_cast %30 : vector<1x1x16x16xf32> to vector<16x16xf32>
    %32 = vector.broadcast %29 : f32 to vector<16x16xf32>
    %33 = arith.mulf %32, %31 : vector<16x16xf32>
    %34 = arith.addf %28, %33 : vector<16x16xf32>
    %c0_30 = arith.constant 0 : index
    %35 = memref.load %arg6[%c0_30] : memref<4xf32, #tpu.memory_space<smem>>
    %36 = vector.broadcast %35 : f32 to vector<16x16xf32>
    %37 = arith.addf %34, %36 : vector<16x16xf32>
    %cst = arith.constant 0.000000e+00 : f32
    %38 = vector.broadcast %cst : f32 to vector<16x16xf32>
    %39 = arith.cmpf oge, %37, %38 : vector<16x16xf32>
    %cst_31 = arith.constant 2.000000e-01 : f32
    %40 = vector.broadcast %cst_31 : f32 to vector<16x16xf32>
    %41 = arith.mulf %40, %37 : vector<16x16xf32>
    %42 = arith.select %39, %37, %41 : vector<16x16xi1>, vector<16x16xf32>
    %43 = arith.truncf %42 : vector<16x16xf32> to vector<16x16xbf16>
    %c0_32 = arith.constant 0 : index
    %c0_33 = arith.constant 0 : index
    %c0_34 = arith.constant 0 : index
    %c0_35 = arith.constant 0 : index
    %44 = vector.load %arg7[%c0_32, %c0_33, %c0_34, %c0_35] : memref<1x8x16x16xbf16, #tpu.memory_space<vmem>>, vector<1x1x16x16xbf16>
    %45 = vector.shape_cast %44 : vector<1x1x16x16xbf16> to vector<16x16xbf16>
    %46 = vector.shape_cast %43 : vector<16x16xbf16> to vector<1x1x16x16xbf16>
    tpu.vector_store %arg7[%c0_32, %c0_33, %c0_34, %c0_35], %46 {strides = array<i32>} : memref<1x8x16x16xbf16, #tpu.memory_space<vmem>>, vector<1x1x16x16xbf16>,
    %c1_36 = arith.constant 1 : index
    %c0_37 = arith.constant 0 : index
    %47 = memref.load %arg5[%c1_36, %c0_37] : memref<4x6xf32, #tpu.memory_space<smem>>
    %c0_38 = arith.constant 0 : index
    %c0_39 = arith.constant 0 : index
    %c0_40 = arith.constant 0 : index
    %c0_41 = arith.constant 0 : index
    %48 = vector.load %arg2[%c0_38, %c0_39, %c0_40, %c0_41] : memref<1x6x16x16xf32, #tpu.memory_space<vmem>>, vector<1x1x16x16xf32>
    %49 = vector.shape_cast %48 : vector<1x1x16x16xf32> to vector<16x16xf32>
    %50 = vector.broadcast %47 : f32 to vector<16x16xf32>
    %51 = arith.mulf %50, %49 : vector<16x16xf32>
    %c1_42 = arith.constant 1 : index
    %c1_43 = arith.constant 1 : index
    %52 = memref.load %arg5[%c1_42, %c1_43] : memref<4x6xf32, #tpu.memory_space<smem>>
    %c0_44 = arith.constant 0 : index
    %c1_45 = arith.constant 1 : index
    %c0_46 = arith.constant 0 : index
    %c0_47 = arith.constant 0 : index
    %53 = vector.load %arg2[%c0_44, %c1_45, %c0_46, %c0_47] : memref<1x6x16x16xf32, #tpu.memory_space<vmem>>, vector<1x1x16x16xf32>
    %54 = vector.shape_cast %53 : vector<1x1x16x16xf32> to vector<16x16xf32>
    %55 = vector.broadcast %52 : f32 to vector<16x16xf32>
    %56 = arith.mulf %55, %54 : vector<16x16xf32>
    %57 = arith.addf %51, %56 : vector<16x16xf32>
    %c1_48 = arith.constant 1 : index
    %c2_49 = arith.constant 2 : index
    %58 = memref.load %arg5[%c1_48, %c2_49] : memref<4x6xf32, #tpu.memory_space<smem>>
    %c0_50 = arith.constant 0 : index
    %c2_51 = arith.constant 2 : index
    %c0_52 = arith.constant 0 : index
    %c0_53 = arith.constant 0 : index
    %59 = vector.load %arg2[%c0_50, %c2_51, %c0_52, %c0_53] : memref<1x6x16x16xf32, #tpu.memory_space<vmem>>, vector<1x1x16x16xf32>
    %60 = vector.shape_cast %59 : vector<1x1x16x16xf32> to vector<16x16xf32>
    %61 = vector.broadcast %58 : f32 to vector<16x16xf32>
    %62 = arith.mulf %61, %60 : vector<16x16xf32>
    %63 = arith.addf %57, %62 : vector<16x16xf32>
    %c1_54 = arith.constant 1 : index
    %c3_55 = arith.constant 3 : index
    %64 = memref.load %arg5[%c1_54, %c3_55] : memref<4x6xf32, #tpu.memory_space<smem>>
    %c0_56 = arith.constant 0 : index
    %c3_57 = arith.constant 3 : index
    %c0_58 = arith.constant 0 : index
    %c0_59 = arith.constant 0 : index
    %65 = vector.load %arg2[%c0_56, %c3_57, %c0_58, %c0_59] : memref<1x6x16x16xf32, #tpu.memory_space<vmem>>, vector<1x1x16x16xf32>
    %66 = vector.shape_cast %65 : vector<1x1x16x16xf32> to vector<16x16xf32>
    %67 = vector.broadcast %64 : f32 to vector<16x16xf32>
    %68 = arith.mulf %67, %66 : vector<16x16xf32>
    %69 = arith.addf %63, %68 : vector<16x16xf32>
    %c1_60 = arith.constant 1 : index
    %c4_61 = arith.constant 4 : index
    %70 = memref.load %arg5[%c1_60, %c4_61] : memref<4x6xf32, #tpu.memory_space<smem>>
    %c0_62 = arith.constant 0 : index
    %c4_63 = arith.constant 4 : index
    %c0_64 = arith.constant 0 : index
    %c0_65 = arith.constant 0 : index
    %71 = vector.load %arg2[%c0_62, %c4_63, %c0_64, %c0_65] : memref<1x6x16x16xf32, #tpu.memory_space<vmem>>, vector<1x1x16x16xf32>
    %72 = vector.shape_cast %71 : vector<1x1x16x16xf32> to vector<16x16xf32>
    %73 = vector.broadcast %70 : f32 to vector<16x16xf32>
    %74 = arith.mulf %73, %72 : vector<16x16xf32>
    %75 = arith.addf %69, %74 : vector<16x16xf32>
    %c1_66 = arith.constant 1 : index
    %c5_67 = arith.constant 5 : index
    %76 = memref.load %arg5[%c1_66, %c5_67] : memref<4x6xf32, #tpu.memory_space<smem>>
    %c0_68 = arith.constant 0 : index
    %c5_69 = arith.constant 5 : index
    %c0_70 = arith.constant 0 : index
    %c0_71 = arith.constant 0 : index
    %77 = vector.load %arg2[%c0_68, %c5_69, %c0_70, %c0_71] : memref<1x6x16x16xf32, #tpu.memory_space<vmem>>, vector<1x1x16x16xf32>
    %78 = vector.shape_cast %77 : vector<1x1x16x16xf32> to vector<16x16xf32>
    %79 = vector.broadcast %76 : f32 to vector<16x16xf32>
    %80 = arith.mulf %79, %78 : vector<16x16xf32>
    %81 = arith.addf %75, %80 : vector<16x16xf32>
    %c1_72 = arith.constant 1 : index
    %82 = memref.load %arg6[%c1_72] : memref<4xf32, #tpu.memory_space<smem>>
    %83 = vector.broadcast %82 : f32 to vector<16x16xf32>
    %84 = arith.addf %81, %83 : vector<16x16xf32>
    %cst_73 = arith.constant 0.000000e+00 : f32
    %85 = vector.broadcast %cst_73 : f32 to vector<16x16xf32>
    %86 = arith.cmpf oge, %84, %85 : vector<16x16xf32>
    %cst_74 = arith.constant 2.000000e-01 : f32
    %87 = vector.broadcast %cst_74 : f32 to vector<16x16xf32>
    %88 = arith.mulf %87, %84 : vector<16x16xf32>
    %89 = arith.select %86, %84, %88 : vector<16x16xi1>, vector<16x16xf32>
    %90 = arith.truncf %89 : vector<16x16xf32> to vector<16x16xbf16>
    %c0_75 = arith.constant 0 : index
    %c1_76 = arith.constant 1 : index
    %c0_77 = arith.constant 0 : index
    %c0_78 = arith.constant 0 : index
    %91 = vector.load %arg7[%c0_75, %c1_76, %c0_77, %c0_78] : memref<1x8x16x16xbf16, #tpu.memory_space<vmem>>, vector<1x1x16x16xbf16>
    %92 = vector.shape_cast %91 : vector<1x1x16x16xbf16> to vector<16x16xbf16>
    %93 = vector.shape_cast %90 : vector<16x16xbf16> to vector<1x1x16x16xbf16>
    tpu.vector_store %arg7[%c0_75, %c1_76, %c0_77, %c0_78], %93 {strides = array<i32>} : memref<1x8x16x16xbf16, #tpu.memory_space<vmem>>, vector<1x1x16x16xbf16>,
    %c2_79 = arith.constant 2 : index
    %c0_80 = arith.constant 0 : index
    %94 = memref.load %arg5[%c2_79, %c0_80] : memref<4x6xf32, #tpu.memory_space<smem>>
    %c0_81 = arith.constant 0 : index
    %c0_82 = arith.constant 0 : index
    %c0_83 = arith.constant 0 : index
    %c0_84 = arith.constant 0 : index
    %95 = vector.load %arg2[%c0_81, %c0_82, %c0_83, %c0_84] : memref<1x6x16x16xf32, #tpu.memory_space<vmem>>, vector<1x1x16x16xf32>
    %96 = vector.shape_cast %95 : vector<1x1x16x16xf32> to vector<16x16xf32>
    %97 = vector.broadcast %94 : f32 to vector<16x16xf32>
    %98 = arith.mulf %97, %96 : vector<16x16xf32>
    %c2_85 = arith.constant 2 : index
    %c1_86 = arith.constant 1 : index
    %99 = memref.load %arg5[%c2_85, %c1_86] : memref<4x6xf32, #tpu.memory_space<smem>>
    %c0_87 = arith.constant 0 : index
    %c1_88 = arith.constant 1 : index
    %c0_89 = arith.constant 0 : index
    %c0_90 = arith.constant 0 : index
    %100 = vector.load %arg2[%c0_87, %c1_88, %c0_89, %c0_90] : memref<1x6x16x16xf32, #tpu.memory_space<vmem>>, vector<1x1x16x16xf32>
    %101 = vector.shape_cast %100 : vector<1x1x16x16xf32> to vector<16x16xf32>
    %102 = vector.broadcast %99 : f32 to vector<16x16xf32>
    %103 = arith.mulf %102, %101 : vector<16x16xf32>
    %104 = arith.addf %98, %103 : vector<16x16xf32>
    %c2_91 = arith.constant 2 : index
    %c2_92 = arith.constant 2 : index
    %105 = memref.load %arg5[%c2_91, %c2_92] : memref<4x6xf32, #tpu.memory_space<smem>>
    %c0_93 = arith.constant 0 : index
    %c2_94 = arith.constant 2 : index
    %c0_95 = arith.constant 0 : index
    %c0_96 = arith.constant 0 : index
    %106 = vector.load %arg2[%c0_93, %c2_94, %c0_95, %c0_96] : memref<1x6x16x16xf32, #tpu.memory_space<vmem>>, vector<1x1x16x16xf32>
    %107 = vector.shape_cast %106 : vector<1x1x16x16xf32> to vector<16x16xf32>
    %108 = vector.broadcast %105 : f32 to vector<16x16xf32>
    %109 = arith.mulf %108, %107 : vector<16x16xf32>
    %110 = arith.addf %104, %109 : vector<16x16xf32>
    %c2_97 = arith.constant 2 : index
    %c3_98 = arith.constant 3 : index
    %111 = memref.load %arg5[%c2_97, %c3_98] : memref<4x6xf32, #tpu.memory_space<smem>>
    %c0_99 = arith.constant 0 : index
    %c3_100 = arith.constant 3 : index
    %c0_101 = arith.constant 0 : index
    %c0_102 = arith.constant 0 : index
    %112 = vector.load %arg2[%c0_99, %c3_100, %c0_101, %c0_102] : memref<1x6x16x16xf32, #tpu.memory_space<vmem>>, vector<1x1x16x16xf32>
    %113 = vector.shape_cast %112 : vector<1x1x16x16xf32> to vector<16x16xf32>
    %114 = vector.broadcast %111 : f32 to vector<16x16xf32>
    %115 = arith.mulf %114, %113 : vector<16x16xf32>
    %116 = arith.addf %110, %115 : vector<16x16xf32>
    %c2_103 = arith.constant 2 : index
    %c4_104 = arith.constant 4 : index
    %117 = memref.load %arg5[%c2_103, %c4_104] : memref<4x6xf32, #tpu.memory_space<smem>>
    %c0_105 = arith.constant 0 : index
    %c4_106 = arith.constant 4 : index
    %c0_107 = arith.constant 0 : index
    %c0_108 = arith.constant 0 : index
    %118 = vector.load %arg2[%c0_105, %c4_106, %c0_107, %c0_108] : memref<1x6x16x16xf32, #tpu.memory_space<vmem>>, vector<1x1x16x16xf32>
    %119 = vector.shape_cast %118 : vector<1x1x16x16xf32> to vector<16x16xf32>
    %120 = vector.broadcast %117 : f32 to vector<16x16xf32>
    %121 = arith.mulf %120, %119 : vector<16x16xf32>
    %122 = arith.addf %116, %121 : vector<16x16xf32>
    %c2_109 = arith.constant 2 : index
    %c5_110 = arith.constant 5 : index
    %123 = memref.load %arg5[%c2_109, %c5_110] : memref<4x6xf32, #tpu.memory_space<smem>>
    %c0_111 = arith.constant 0 : index
    %c5_112 = arith.constant 5 : index
    %c0_113 = arith.constant 0 : index
    %c0_114 = arith.constant 0 : index
    %124 = vector.load %arg2[%c0_111, %c5_112, %c0_113, %c0_114] : memref<1x6x16x16xf32, #tpu.memory_space<vmem>>, vector<1x1x16x16xf32>
    %125 = vector.shape_cast %124 : vector<1x1x16x16xf32> to vector<16x16xf32>
    %126 = vector.broadcast %123 : f32 to vector<16x16xf32>
    %127 = arith.mulf %126, %125 : vector<16x16xf32>
    %128 = arith.addf %122, %127 : vector<16x16xf32>
    %c2_115 = arith.constant 2 : index
    %129 = memref.load %arg6[%c2_115] : memref<4xf32, #tpu.memory_space<smem>>
    %130 = vector.broadcast %129 : f32 to vector<16x16xf32>
    %131 = arith.addf %128, %130 : vector<16x16xf32>
    %cst_116 = arith.constant 0.000000e+00 : f32
    %132 = vector.broadcast %cst_116 : f32 to vector<16x16xf32>
    %133 = arith.cmpf oge, %131, %132 : vector<16x16xf32>
    %cst_117 = arith.constant 2.000000e-01 : f32
    %134 = vector.broadcast %cst_117 : f32 to vector<16x16xf32>
    %135 = arith.mulf %134, %131 : vector<16x16xf32>
    %136 = arith.select %133, %131, %135 : vector<16x16xi1>, vector<16x16xf32>
    %137 = arith.truncf %136 : vector<16x16xf32> to vector<16x16xbf16>
    %c0_118 = arith.constant 0 : index
    %c2_119 = arith.constant 2 : index
    %c0_120 = arith.constant 0 : index
    %c0_121 = arith.constant 0 : index
    %138 = vector.load %arg7[%c0_118, %c2_119, %c0_120, %c0_121] : memref<1x8x16x16xbf16, #tpu.memory_space<vmem>>, vector<1x1x16x16xbf16>
    %139 = vector.shape_cast %138 : vector<1x1x16x16xbf16> to vector<16x16xbf16>
    %140 = vector.shape_cast %137 : vector<16x16xbf16> to vector<1x1x16x16xbf16>
    tpu.vector_store %arg7[%c0_118, %c2_119, %c0_120, %c0_121], %140 {strides = array<i32>} : memref<1x8x16x16xbf16, #tpu.memory_space<vmem>>, vector<1x1x16x16xbf16>,
    %c3_122 = arith.constant 3 : index
    %c0_123 = arith.constant 0 : index
    %141 = memref.load %arg5[%c3_122, %c0_123] : memref<4x6xf32, #tpu.memory_space<smem>>
    %c0_124 = arith.constant 0 : index
    %c0_125 = arith.constant 0 : index
    %c0_126 = arith.constant 0 : index
    %c0_127 = arith.constant 0 : index
    %142 = vector.load %arg2[%c0_124, %c0_125, %c0_126, %c0_127] : memref<1x6x16x16xf32, #tpu.memory_space<vmem>>, vector<1x1x16x16xf32>
    %143 = vector.shape_cast %142 : vector<1x1x16x16xf32> to vector<16x16xf32>
    %144 = vector.broadcast %141 : f32 to vector<16x16xf32>
    %145 = arith.mulf %144, %143 : vector<16x16xf32>
    %c3_128 = arith.constant 3 : index
    %c1_129 = arith.constant 1 : index
    %146 = memref.load %arg5[%c3_128, %c1_129] : memref<4x6xf32, #tpu.memory_space<smem>>
    %c0_130 = arith.constant 0 : index
    %c1_131 = arith.constant 1 : index
    %c0_132 = arith.constant 0 : index
    %c0_133 = arith.constant 0 : index
    %147 = vector.load %arg2[%c0_130, %c1_131, %c0_132, %c0_133] : memref<1x6x16x16xf32, #tpu.memory_space<vmem>>, vector<1x1x16x16xf32>
    %148 = vector.shape_cast %147 : vector<1x1x16x16xf32> to vector<16x16xf32>
    %149 = vector.broadcast %146 : f32 to vector<16x16xf32>
    %150 = arith.mulf %149, %148 : vector<16x16xf32>
    %151 = arith.addf %145, %150 : vector<16x16xf32>
    %c3_134 = arith.constant 3 : index
    %c2_135 = arith.constant 2 : index
    %152 = memref.load %arg5[%c3_134, %c2_135] : memref<4x6xf32, #tpu.memory_space<smem>>
    %c0_136 = arith.constant 0 : index
    %c2_137 = arith.constant 2 : index
    %c0_138 = arith.constant 0 : index
    %c0_139 = arith.constant 0 : index
    %153 = vector.load %arg2[%c0_136, %c2_137, %c0_138, %c0_139] : memref<1x6x16x16xf32, #tpu.memory_space<vmem>>, vector<1x1x16x16xf32>
    %154 = vector.shape_cast %153 : vector<1x1x16x16xf32> to vector<16x16xf32>
    %155 = vector.broadcast %152 : f32 to vector<16x16xf32>
    %156 = arith.mulf %155, %154 : vector<16x16xf32>
    %157 = arith.addf %151, %156 : vector<16x16xf32>
    %c3_140 = arith.constant 3 : index
    %c3_141 = arith.constant 3 : index
    %158 = memref.load %arg5[%c3_140, %c3_141] : memref<4x6xf32, #tpu.memory_space<smem>>
    %c0_142 = arith.constant 0 : index
    %c3_143 = arith.constant 3 : index
    %c0_144 = arith.constant 0 : index
    %c0_145 = arith.constant 0 : index
    %159 = vector.load %arg2[%c0_142, %c3_143, %c0_144, %c0_145] : memref<1x6x16x16xf32, #tpu.memory_space<vmem>>, vector<1x1x16x16xf32>
    %160 = vector.shape_cast %159 : vector<1x1x16x16xf32> to vector<16x16xf32>
    %161 = vector.broadcast %158 : f32 to vector<16x16xf32>
    %162 = arith.mulf %161, %160 : vector<16x16xf32>
    %163 = arith.addf %157, %162 : vector<16x16xf32>
    %c3_146 = arith.constant 3 : index
    %c4_147 = arith.constant 4 : index
    %164 = memref.load %arg5[%c3_146, %c4_147] : memref<4x6xf32, #tpu.memory_space<smem>>
    %c0_148 = arith.constant 0 : index
    %c4_149 = arith.constant 4 : index
    %c0_150 = arith.constant 0 : index
    %c0_151 = arith.constant 0 : index
    %165 = vector.load %arg2[%c0_148, %c4_149, %c0_150, %c0_151] : memref<1x6x16x16xf32, #tpu.memory_space<vmem>>, vector<1x1x16x16xf32>
    %166 = vector.shape_cast %165 : vector<1x1x16x16xf32> to vector<16x16xf32>
    %167 = vector.broadcast %164 : f32 to vector<16x16xf32>
    %168 = arith.mulf %167, %166 : vector<16x16xf32>
    %169 = arith.addf %163, %168 : vector<16x16xf32>
    %c3_152 = arith.constant 3 : index
    %c5_153 = arith.constant 5 : index
    %170 = memref.load %arg5[%c3_152, %c5_153] : memref<4x6xf32, #tpu.memory_space<smem>>
    %c0_154 = arith.constant 0 : index
    %c5_155 = arith.constant 5 : index
    %c0_156 = arith.constant 0 : index
    %c0_157 = arith.constant 0 : index
    %171 = vector.load %arg2[%c0_154, %c5_155, %c0_156, %c0_157] : memref<1x6x16x16xf32, #tpu.memory_space<vmem>>, vector<1x1x16x16xf32>
    %172 = vector.shape_cast %171 : vector<1x1x16x16xf32> to vector<16x16xf32>
    %173 = vector.broadcast %170 : f32 to vector<16x16xf32>
    %174 = arith.mulf %173, %172 : vector<16x16xf32>
    %175 = arith.addf %169, %174 : vector<16x16xf32>
    %c3_158 = arith.constant 3 : index
    %176 = memref.load %arg6[%c3_158] : memref<4xf32, #tpu.memory_space<smem>>
    %177 = vector.broadcast %176 : f32 to vector<16x16xf32>
    %178 = arith.addf %175, %177 : vector<16x16xf32>
    %cst_159 = arith.constant 0.000000e+00 : f32
    %179 = vector.broadcast %cst_159 : f32 to vector<16x16xf32>
    %180 = arith.cmpf oge, %178, %179 : vector<16x16xf32>
    %cst_160 = arith.constant 2.000000e-01 : f32
    %181 = vector.broadcast %cst_160 : f32 to vector<16x16xf32>
    %182 = arith.mulf %181, %178 : vector<16x16xf32>
    %183 = arith.select %180, %178, %182 : vector<16x16xi1>, vector<16x16xf32>
    %184 = arith.truncf %183 : vector<16x16xf32> to vector<16x16xbf16>
    %c0_161 = arith.constant 0 : index
    %c3_162 = arith.constant 3 : index
    %c0_163 = arith.constant 0 : index
    %c0_164 = arith.constant 0 : index
    %185 = vector.load %arg7[%c0_161, %c3_162, %c0_163, %c0_164] : memref<1x8x16x16xbf16, #tpu.memory_space<vmem>>, vector<1x1x16x16xbf16>
    %186 = vector.shape_cast %185 : vector<1x1x16x16xbf16> to vector<16x16xbf16>
    %187 = vector.shape_cast %184 : vector<16x16xbf16> to vector<1x1x16x16xbf16>
    tpu.vector_store %arg7[%c0_161, %c3_162, %c0_163, %c0_164], %187 {strides = array<i32>} : memref<1x8x16x16xbf16, #tpu.memory_space<vmem>>, vector<1x1x16x16xbf16>,
    %c0_165 = arith.constant 0 : index
    %c0_166 = arith.constant 0 : index
    %188 = vector.load %arg3[%c0_165, %c0_166] : memref<16x8xf32, #tpu.memory_space<vmem>>, vector<16x8xf32>
    %c0_167 = arith.constant 0 : index
    %c0_168 = arith.constant 0 : index
    %189 = vector.load %arg4[%c0_167, %c0_168] : memref<8x16xf32, #tpu.memory_space<vmem>>, vector<8x16xf32>
    %c0_169 = arith.constant 0 : index
    %c0_170 = arith.constant 0 : index
    %c0_171 = arith.constant 0 : index
    %c0_172 = arith.constant 0 : index
    %190 = vector.load %arg1[%c0_169, %c0_170, %c0_171, %c0_172] : memref<1x4x8x8xf32, #tpu.memory_space<vmem>>, vector<1x1x8x8xf32>
    %191 = vector.shape_cast %190 : vector<1x1x8x8xf32> to vector<8x8xf32>
    %cst_173 = arith.constant dense<0.000000e+00> : vector<16x8xf32>
    %192 = tpu.matmul %188, %191, %cst_173 {dimension_numbers = #tpu.dot_dimension_numbers<[1], [0], [0], [1], [0, 0, 1, 1], [], []>} : vector<16x8xf32>, vector<8x8xf32>, vector<16x8xf32> -> vector<16x8xf32>
    %cst_174 = arith.constant dense<0.000000e+00> : vector<16x16xf32>
    %193 = tpu.matmul %192, %189, %cst_174 {dimension_numbers = #tpu.dot_dimension_numbers<[1], [0], [0], [1], [0, 0, 1, 1], [], []>} : vector<16x8xf32>, vector<8x16xf32>, vector<16x16xf32> -> vector<16x16xf32>
    %194 = arith.truncf %193 : vector<16x16xf32> to vector<16x16xbf16>
    %c0_175 = arith.constant 0 : index
    %c4_176 = arith.constant 4 : index
    %c0_177 = arith.constant 0 : index
    %c0_178 = arith.constant 0 : index
    %195 = vector.load %arg7[%c0_175, %c4_176, %c0_177, %c0_178] : memref<1x8x16x16xbf16, #tpu.memory_space<vmem>>, vector<1x1x16x16xbf16>
    %196 = vector.shape_cast %195 : vector<1x1x16x16xbf16> to vector<16x16xbf16>
    %197 = vector.shape_cast %194 : vector<16x16xbf16> to vector<1x1x16x16xbf16>
    tpu.vector_store %arg7[%c0_175, %c4_176, %c0_177, %c0_178], %197 {strides = array<i32>} : memref<1x8x16x16xbf16, #tpu.memory_space<vmem>>, vector<1x1x16x16xbf16>,
    %c0_179 = arith.constant 0 : index
    %c1_180 = arith.constant 1 : index
    %c0_181 = arith.constant 0 : index
    %c0_182 = arith.constant 0 : index
    %198 = vector.load %arg1[%c0_179, %c1_180, %c0_181, %c0_182] : memref<1x4x8x8xf32, #tpu.memory_space<vmem>>, vector<1x1x8x8xf32>
    %199 = vector.shape_cast %198 : vector<1x1x8x8xf32> to vector<8x8xf32>
    %cst_183 = arith.constant dense<0.000000e+00> : vector<16x8xf32>
    %200 = tpu.matmul %188, %199, %cst_183 {dimension_numbers = #tpu.dot_dimension_numbers<[1], [0], [0], [1], [0, 0, 1, 1], [], []>} : vector<16x8xf32>, vector<8x8xf32>, vector<16x8xf32> -> vector<16x8xf32>
    %cst_184 = arith.constant dense<0.000000e+00> : vector<16x16xf32>
    %201 = tpu.matmul %200, %189, %cst_184 {dimension_numbers = #tpu.dot_dimension_numbers<[1], [0], [0], [1], [0, 0, 1, 1], [], []>} : vector<16x8xf32>, vector<8x16xf32>, vector<16x16xf32> -> vector<16x16xf32>
    %202 = arith.truncf %201 : vector<16x16xf32> to vector<16x16xbf16>
    %c0_185 = arith.constant 0 : index
    %c5_186 = arith.constant 5 : index
    %c0_187 = arith.constant 0 : index
    %c0_188 = arith.constant 0 : index
    %203 = vector.load %arg7[%c0_185, %c5_186, %c0_187, %c0_188] : memref<1x8x16x16xbf16, #tpu.memory_space<vmem>>, vector<1x1x16x16xbf16>
    %204 = vector.shape_cast %203 : vector<1x1x16x16xbf16> to vector<16x16xbf16>
    %205 = vector.shape_cast %202 : vector<16x16xbf16> to vector<1x1x16x16xbf16>
    tpu.vector_store %arg7[%c0_185, %c5_186, %c0_187, %c0_188], %205 {strides = array<i32>} : memref<1x8x16x16xbf16, #tpu.memory_space<vmem>>, vector<1x1x16x16xbf16>,
    %c0_189 = arith.constant 0 : index
    %c2_190 = arith.constant 2 : index
    %c0_191 = arith.constant 0 : index
    %c0_192 = arith.constant 0 : index
    %206 = vector.load %arg1[%c0_189, %c2_190, %c0_191, %c0_192] : memref<1x4x8x8xf32, #tpu.memory_space<vmem>>, vector<1x1x8x8xf32>
    %207 = vector.shape_cast %206 : vector<1x1x8x8xf32> to vector<8x8xf32>
    %cst_193 = arith.constant dense<0.000000e+00> : vector<16x8xf32>
    %208 = tpu.matmul %188, %207, %cst_193 {dimension_numbers = #tpu.dot_dimension_numbers<[1], [0], [0], [1], [0, 0, 1, 1], [], []>} : vector<16x8xf32>, vector<8x8xf32>, vector<16x8xf32> -> vector<16x8xf32>
    %cst_194 = arith.constant dense<0.000000e+00> : vector<16x16xf32>
    %209 = tpu.matmul %208, %189, %cst_194 {dimension_numbers = #tpu.dot_dimension_numbers<[1], [0], [0], [1], [0, 0, 1, 1], [], []>} : vector<16x8xf32>, vector<8x16xf32>, vector<16x16xf32> -> vector<16x16xf32>
    %210 = arith.truncf %209 : vector<16x16xf32> to vector<16x16xbf16>
    %c0_195 = arith.constant 0 : index
    %c6 = arith.constant 6 : index
    %c0_196 = arith.constant 0 : index
    %c0_197 = arith.constant 0 : index
    %211 = vector.load %arg7[%c0_195, %c6, %c0_196, %c0_197] : memref<1x8x16x16xbf16, #tpu.memory_space<vmem>>, vector<1x1x16x16xbf16>
    %212 = vector.shape_cast %211 : vector<1x1x16x16xbf16> to vector<16x16xbf16>
    %213 = vector.shape_cast %210 : vector<16x16xbf16> to vector<1x1x16x16xbf16>
    tpu.vector_store %arg7[%c0_195, %c6, %c0_196, %c0_197], %213 {strides = array<i32>} : memref<1x8x16x16xbf16, #tpu.memory_space<vmem>>, vector<1x1x16x16xbf16>,
    %c0_198 = arith.constant 0 : index
    %c3_199 = arith.constant 3 : index
    %c0_200 = arith.constant 0 : index
    %c0_201 = arith.constant 0 : index
    %214 = vector.load %arg1[%c0_198, %c3_199, %c0_200, %c0_201] : memref<1x4x8x8xf32, #tpu.memory_space<vmem>>, vector<1x1x8x8xf32>
    %215 = vector.shape_cast %214 : vector<1x1x8x8xf32> to vector<8x8xf32>
    %cst_202 = arith.constant dense<0.000000e+00> : vector<16x8xf32>
    %216 = tpu.matmul %188, %215, %cst_202 {dimension_numbers = #tpu.dot_dimension_numbers<[1], [0], [0], [1], [0, 0, 1, 1], [], []>} : vector<16x8xf32>, vector<8x8xf32>, vector<16x8xf32> -> vector<16x8xf32>
    %cst_203 = arith.constant dense<0.000000e+00> : vector<16x16xf32>
    %217 = tpu.matmul %216, %189, %cst_203 {dimension_numbers = #tpu.dot_dimension_numbers<[1], [0], [0], [1], [0, 0, 1, 1], [], []>} : vector<16x8xf32>, vector<8x16xf32>, vector<16x16xf32> -> vector<16x16xf32>
    %218 = arith.truncf %217 : vector<16x16xf32> to vector<16x16xbf16>
    %c0_204 = arith.constant 0 : index
    %c7 = arith.constant 7 : index
    %c0_205 = arith.constant 0 : index
    %c0_206 = arith.constant 0 : index
    %219 = vector.load %arg7[%c0_204, %c7, %c0_205, %c0_206] : memref<1x8x16x16xbf16, #tpu.memory_space<vmem>>, vector<1x1x16x16xbf16>
    %220 = vector.shape_cast %219 : vector<1x1x16x16xbf16> to vector<16x16xbf16>
    %221 = vector.shape_cast %218 : vector<16x16xbf16> to vector<1x1x16x16xbf16>
    tpu.vector_store %arg7[%c0_204, %c7, %c0_205, %c0_206], %221 {strides = array<i32>} : memref<1x8x16x16xbf16, #tpu.memory_space<vmem>>, vector<1x1x16x16xbf16>,
    return
  }
  func.func @transform_0(%arg0: i32) -> (i32, i32, i32, i32) {
    %c0_i32 = arith.constant 0 : i32
    %c0_i32_0 = arith.constant 0 : i32
    %c0_i32_1 = arith.constant 0 : i32
    %c0_i32_2 = arith.constant 0 : i32
    return %arg0, %c0_i32, %c0_i32_0, %c0_i32_1 : i32, i32, i32, i32
  }
  func.func @transform_1(%arg0: i32) -> (i32, i32, i32, i32) {
    %c0_i32 = arith.constant 0 : i32
    %c0_i32_0 = arith.constant 0 : i32
    %c0_i32_1 = arith.constant 0 : i32
    %c0_i32_2 = arith.constant 0 : i32
    return %arg0, %c0_i32, %c0_i32_0, %c0_i32_1 : i32, i32, i32, i32
  }
  func.func @transform_2(%arg0: i32) -> (i32, i32) {
    %c0_i32 = arith.constant 0 : i32
    %c0_i32_0 = arith.constant 0 : i32
    %c0_i32_1 = arith.constant 0 : i32
    return %c0_i32, %c0_i32_0 : i32, i32
  }
  func.func @transform_3(%arg0: i32) -> (i32, i32) {
    %c0_i32 = arith.constant 0 : i32
    %c0_i32_0 = arith.constant 0 : i32
    %c0_i32_1 = arith.constant 0 : i32
    return %c0_i32, %c0_i32_0 : i32, i32
  }
  func.func @transform_4(%arg0: i32) -> (i32, i32) {
    %c0_i32 = arith.constant 0 : i32
    %c0_i32_0 = arith.constant 0 : i32
    %c0_i32_1 = arith.constant 0 : i32
    return %c0_i32, %c0_i32_0 : i32, i32
  }
  func.func @transform_5(%arg0: i32) -> i32 {
    %c0_i32 = arith.constant 0 : i32
    %c0_i32_0 = arith.constant 0 : i32
    return %c0_i32 : i32
  }
  func.func @transform_6(%arg0: i32) -> (i32, i32, i32, i32) {
    %c0_i32 = arith.constant 0 : i32
    %c0_i32_0 = arith.constant 0 : i32
    %c0_i32_1 = arith.constant 0 : i32
    %c0_i32_2 = arith.constant 0 : i32
    return %arg0, %c0_i32, %c0_i32_0, %c0_i32_1 : i32, i32, i32, i32
  }
}

module attributes {stable_mosaic.version = 11 : i64} {
  func.func @_double_conv_kernel(%arg0: i32, %arg1: memref<1x8x256xbf16, #tpu.memory_space<vmem>>, %arg2: memref<4x256xi32, #tpu.memory_space<vmem>>, %arg3: memref<9x8x8xbf16, #tpu.memory_space<vmem>>, %arg4: memref<8x1xf32, #tpu.memory_space<vmem>>, %arg5: memref<9x8x8xbf16, #tpu.memory_space<vmem>>, %arg6: memref<8x1xf32, #tpu.memory_space<vmem>>, %arg7: memref<1x8x256xf32, #tpu.memory_space<vmem>>) attributes {dimension_semantics = [#tpu.dimension_semantics<parallel>], iteration_bounds = array<i64: 2>, scalar_prefetch = 0 : i64, scratch_operands = 0 : i64, tpu.core_type = #tpu.core_type<tc>, window_params = [{transform_indices = @transform_0, window_bounds = array<i64: 1, 8, 256>}, {pipeline_mode = #tpu.pipeline_mode<synchronous>, transform_indices = @transform_1, window_bounds = array<i64: 4, 256>}, {pipeline_mode = #tpu.pipeline_mode<synchronous>, transform_indices = @transform_2, window_bounds = array<i64: 9, 8, 8>}, {pipeline_mode = #tpu.pipeline_mode<synchronous>, transform_indices = @transform_3, window_bounds = array<i64: 8, 1>}, {pipeline_mode = #tpu.pipeline_mode<synchronous>, transform_indices = @transform_4, window_bounds = array<i64: 9, 8, 8>}, {pipeline_mode = #tpu.pipeline_mode<synchronous>, transform_indices = @transform_5, window_bounds = array<i64: 8, 1>}, {transform_indices = @transform_6, window_bounds = array<i64: 1, 8, 256>}]} {
    %c0 = arith.constant 0 : index
    %c0_0 = arith.constant 0 : index
    %0 = vector.load %arg2[%c0, %c0_0] : memref<4x256xi32, #tpu.memory_space<vmem>>, vector<4x256xi32>
    %1 = vector.extract_strided_slice %0 {offsets = [0, 0], sizes = [1, 256], strides = [1, 1]} : vector<4x256xi32> to vector<1x256xi32>
    %c0_i32 = arith.constant 0 : i32
    %2 = vector.broadcast %c0_i32 : i32 to vector<1x256xi32>
    %3 = arith.cmpi ne, %1, %2 : vector<1x256xi32>
    %4 = vector.extract_strided_slice %0 {offsets = [1, 0], sizes = [1, 256], strides = [1, 1]} : vector<4x256xi32> to vector<1x256xi32>
    %c0_i32_1 = arith.constant 0 : i32
    %5 = vector.broadcast %c0_i32_1 : i32 to vector<1x256xi32>
    %6 = arith.cmpi ne, %4, %5 : vector<1x256xi32>
    %7 = vector.extract_strided_slice %0 {offsets = [2, 0], sizes = [1, 256], strides = [1, 1]} : vector<4x256xi32> to vector<1x256xi32>
    %c0_i32_2 = arith.constant 0 : i32
    %8 = vector.broadcast %c0_i32_2 : i32 to vector<1x256xi32>
    %9 = arith.cmpi ne, %7, %8 : vector<1x256xi32>
    %10 = vector.extract_strided_slice %0 {offsets = [3, 0], sizes = [1, 256], strides = [1, 1]} : vector<4x256xi32> to vector<1x256xi32>
    %c0_i32_3 = arith.constant 0 : i32
    %11 = vector.broadcast %c0_i32_3 : i32 to vector<1x256xi32>
    %12 = arith.cmpi ne, %10, %11 : vector<1x256xi32>
    %c0_4 = arith.constant 0 : index
    %c0_5 = arith.constant 0 : index
    %c0_6 = arith.constant 0 : index
    %13 = vector.load %arg1[%c0_4, %c0_5, %c0_6] : memref<1x8x256xbf16, #tpu.memory_space<vmem>>, vector<1x8x256xbf16>
    %14 = vector.shape_cast %13 : vector<1x8x256xbf16> to vector<8x256xbf16>
    %15 = arith.extf %14 : vector<8x256xbf16> to vector<8x256xf32>
    %16 = vector.extract_strided_slice %15 {offsets = [0, 1], sizes = [8, 255], strides = [1, 1]} : vector<8x256xf32> to vector<8x255xf32>
    %17 = vector.extract_strided_slice %15 {offsets = [0, 0], sizes = [8, 1], strides = [1, 1]} : vector<8x256xf32> to vector<8x1xf32>
    %18 = tpu.concatenate %16, %17 in 1 : vector<8x255xf32>, vector<8x1xf32> -> vector<8x256xf32>
    %19 = vector.extract_strided_slice %15 {offsets = [0, 255], sizes = [8, 1], strides = [1, 1]} : vector<8x256xf32> to vector<8x1xf32>
    %20 = vector.extract_strided_slice %15 {offsets = [0, 0], sizes = [8, 255], strides = [1, 1]} : vector<8x256xf32> to vector<8x255xf32>
    %21 = tpu.concatenate %19, %20 in 1 : vector<8x1xf32>, vector<8x255xf32> -> vector<8x256xf32>
    %22 = vector.shape_cast %3 : vector<1x256xi1> to vector<1x256xi1>
    %23 = vector.broadcast %22 : vector<1x256xi1> to vector<8x256xi1>
    %24 = arith.select %23, %18, %21 : vector<8x256xi1>, vector<8x256xf32>
    %25 = vector.extract_strided_slice %15 {offsets = [0, 255], sizes = [8, 1], strides = [1, 1]} : vector<8x256xf32> to vector<8x1xf32>
    %26 = vector.extract_strided_slice %15 {offsets = [0, 0], sizes = [8, 255], strides = [1, 1]} : vector<8x256xf32> to vector<8x255xf32>
    %27 = tpu.concatenate %25, %26 in 1 : vector<8x1xf32>, vector<8x255xf32> -> vector<8x256xf32>
    %28 = vector.extract_strided_slice %15 {offsets = [0, 1], sizes = [8, 255], strides = [1, 1]} : vector<8x256xf32> to vector<8x255xf32>
    %29 = vector.extract_strided_slice %15 {offsets = [0, 0], sizes = [8, 1], strides = [1, 1]} : vector<8x256xf32> to vector<8x1xf32>
    %30 = tpu.concatenate %28, %29 in 1 : vector<8x255xf32>, vector<8x1xf32> -> vector<8x256xf32>
    %31 = vector.shape_cast %6 : vector<1x256xi1> to vector<1x256xi1>
    %32 = vector.broadcast %31 : vector<1x256xi1> to vector<8x256xi1>
    %33 = arith.select %32, %27, %30 : vector<8x256xi1>, vector<8x256xf32>
    %34 = vector.extract_strided_slice %24 {offsets = [0, 16], sizes = [8, 240], strides = [1, 1]} : vector<8x256xf32> to vector<8x240xf32>
    %35 = vector.extract_strided_slice %24 {offsets = [0, 0], sizes = [8, 16], strides = [1, 1]} : vector<8x256xf32> to vector<8x16xf32>
    %36 = tpu.concatenate %34, %35 in 1 : vector<8x240xf32>, vector<8x16xf32> -> vector<8x256xf32>
    %37 = vector.extract_strided_slice %24 {offsets = [0, 240], sizes = [8, 16], strides = [1, 1]} : vector<8x256xf32> to vector<8x16xf32>
    %38 = vector.extract_strided_slice %24 {offsets = [0, 0], sizes = [8, 240], strides = [1, 1]} : vector<8x256xf32> to vector<8x240xf32>
    %39 = tpu.concatenate %37, %38 in 1 : vector<8x16xf32>, vector<8x240xf32> -> vector<8x256xf32>
    %40 = vector.shape_cast %9 : vector<1x256xi1> to vector<1x256xi1>
    %41 = vector.broadcast %40 : vector<1x256xi1> to vector<8x256xi1>
    %42 = arith.select %41, %36, %39 : vector<8x256xi1>, vector<8x256xf32>
    %43 = vector.extract_strided_slice %15 {offsets = [0, 16], sizes = [8, 240], strides = [1, 1]} : vector<8x256xf32> to vector<8x240xf32>
    %44 = vector.extract_strided_slice %15 {offsets = [0, 0], sizes = [8, 16], strides = [1, 1]} : vector<8x256xf32> to vector<8x16xf32>
    %45 = tpu.concatenate %43, %44 in 1 : vector<8x240xf32>, vector<8x16xf32> -> vector<8x256xf32>
    %46 = vector.extract_strided_slice %15 {offsets = [0, 240], sizes = [8, 16], strides = [1, 1]} : vector<8x256xf32> to vector<8x16xf32>
    %47 = vector.extract_strided_slice %15 {offsets = [0, 0], sizes = [8, 240], strides = [1, 1]} : vector<8x256xf32> to vector<8x240xf32>
    %48 = tpu.concatenate %46, %47 in 1 : vector<8x16xf32>, vector<8x240xf32> -> vector<8x256xf32>
    %49 = vector.shape_cast %9 : vector<1x256xi1> to vector<1x256xi1>
    %50 = vector.broadcast %49 : vector<1x256xi1> to vector<8x256xi1>
    %51 = arith.select %50, %45, %48 : vector<8x256xi1>, vector<8x256xf32>
    %52 = vector.extract_strided_slice %33 {offsets = [0, 16], sizes = [8, 240], strides = [1, 1]} : vector<8x256xf32> to vector<8x240xf32>
    %53 = vector.extract_strided_slice %33 {offsets = [0, 0], sizes = [8, 16], strides = [1, 1]} : vector<8x256xf32> to vector<8x16xf32>
    %54 = tpu.concatenate %52, %53 in 1 : vector<8x240xf32>, vector<8x16xf32> -> vector<8x256xf32>
    %55 = vector.extract_strided_slice %33 {offsets = [0, 240], sizes = [8, 16], strides = [1, 1]} : vector<8x256xf32> to vector<8x16xf32>
    %56 = vector.extract_strided_slice %33 {offsets = [0, 0], sizes = [8, 240], strides = [1, 1]} : vector<8x256xf32> to vector<8x240xf32>
    %57 = tpu.concatenate %55, %56 in 1 : vector<8x16xf32>, vector<8x240xf32> -> vector<8x256xf32>
    %58 = vector.shape_cast %9 : vector<1x256xi1> to vector<1x256xi1>
    %59 = vector.broadcast %58 : vector<1x256xi1> to vector<8x256xi1>
    %60 = arith.select %59, %54, %57 : vector<8x256xi1>, vector<8x256xf32>
    %61 = vector.extract_strided_slice %24 {offsets = [0, 240], sizes = [8, 16], strides = [1, 1]} : vector<8x256xf32> to vector<8x16xf32>
    %62 = vector.extract_strided_slice %24 {offsets = [0, 0], sizes = [8, 240], strides = [1, 1]} : vector<8x256xf32> to vector<8x240xf32>
    %63 = tpu.concatenate %61, %62 in 1 : vector<8x16xf32>, vector<8x240xf32> -> vector<8x256xf32>
    %64 = vector.extract_strided_slice %24 {offsets = [0, 16], sizes = [8, 240], strides = [1, 1]} : vector<8x256xf32> to vector<8x240xf32>
    %65 = vector.extract_strided_slice %24 {offsets = [0, 0], sizes = [8, 16], strides = [1, 1]} : vector<8x256xf32> to vector<8x16xf32>
    %66 = tpu.concatenate %64, %65 in 1 : vector<8x240xf32>, vector<8x16xf32> -> vector<8x256xf32>
    %67 = vector.shape_cast %12 : vector<1x256xi1> to vector<1x256xi1>
    %68 = vector.broadcast %67 : vector<1x256xi1> to vector<8x256xi1>
    %69 = arith.select %68, %63, %66 : vector<8x256xi1>, vector<8x256xf32>
    %70 = vector.extract_strided_slice %15 {offsets = [0, 240], sizes = [8, 16], strides = [1, 1]} : vector<8x256xf32> to vector<8x16xf32>
    %71 = vector.extract_strided_slice %15 {offsets = [0, 0], sizes = [8, 240], strides = [1, 1]} : vector<8x256xf32> to vector<8x240xf32>
    %72 = tpu.concatenate %70, %71 in 1 : vector<8x16xf32>, vector<8x240xf32> -> vector<8x256xf32>
    %73 = vector.extract_strided_slice %15 {offsets = [0, 16], sizes = [8, 240], strides = [1, 1]} : vector<8x256xf32> to vector<8x240xf32>
    %74 = vector.extract_strided_slice %15 {offsets = [0, 0], sizes = [8, 16], strides = [1, 1]} : vector<8x256xf32> to vector<8x16xf32>
    %75 = tpu.concatenate %73, %74 in 1 : vector<8x240xf32>, vector<8x16xf32> -> vector<8x256xf32>
    %76 = vector.shape_cast %12 : vector<1x256xi1> to vector<1x256xi1>
    %77 = vector.broadcast %76 : vector<1x256xi1> to vector<8x256xi1>
    %78 = arith.select %77, %72, %75 : vector<8x256xi1>, vector<8x256xf32>
    %79 = vector.extract_strided_slice %33 {offsets = [0, 240], sizes = [8, 16], strides = [1, 1]} : vector<8x256xf32> to vector<8x16xf32>
    %80 = vector.extract_strided_slice %33 {offsets = [0, 0], sizes = [8, 240], strides = [1, 1]} : vector<8x256xf32> to vector<8x240xf32>
    %81 = tpu.concatenate %79, %80 in 1 : vector<8x16xf32>, vector<8x240xf32> -> vector<8x256xf32>
    %82 = vector.extract_strided_slice %33 {offsets = [0, 16], sizes = [8, 240], strides = [1, 1]} : vector<8x256xf32> to vector<8x240xf32>
    %83 = vector.extract_strided_slice %33 {offsets = [0, 0], sizes = [8, 16], strides = [1, 1]} : vector<8x256xf32> to vector<8x16xf32>
    %84 = tpu.concatenate %82, %83 in 1 : vector<8x240xf32>, vector<8x16xf32> -> vector<8x256xf32>
    %85 = vector.shape_cast %12 : vector<1x256xi1> to vector<1x256xi1>
    %86 = vector.broadcast %85 : vector<1x256xi1> to vector<8x256xi1>
    %87 = arith.select %86, %81, %84 : vector<8x256xi1>, vector<8x256xf32>
    %cst = arith.constant 0.000000e+00 : f32
    %88 = vector.broadcast %cst : f32 to vector<8x256xf32>
    %c0_7 = arith.constant 0 : index
    %c0_8 = arith.constant 0 : index
    %c0_9 = arith.constant 0 : index
    %89 = vector.load %arg3[%c0_7, %c0_8, %c0_9] : memref<9x8x8xbf16, #tpu.memory_space<vmem>>, vector<1x8x8xbf16>
    %90 = vector.shape_cast %89 : vector<1x8x8xbf16> to vector<8x8xbf16>
    %91 = arith.truncf %42 : vector<8x256xf32> to vector<8x256xbf16>
    %cst_10 = arith.constant dense<0.000000e+00> : vector<8x256xf32>
    %92 = tpu.matmul %90, %91, %cst_10 {dimension_numbers = #tpu.dot_dimension_numbers<[1], [0], [0], [1], [0, 0, 1, 1], [], []>} : vector<8x8xbf16>, vector<8x256xbf16>, vector<8x256xf32> -> vector<8x256xf32>
    %93 = arith.addf %88, %92 : vector<8x256xf32>
    %c1 = arith.constant 1 : index
    %c0_11 = arith.constant 0 : index
    %c0_12 = arith.constant 0 : index
    %94 = vector.load %arg3[%c1, %c0_11, %c0_12] : memref<9x8x8xbf16, #tpu.memory_space<vmem>>, vector<1x8x8xbf16>
    %95 = vector.shape_cast %94 : vector<1x8x8xbf16> to vector<8x8xbf16>
    %96 = arith.truncf %51 : vector<8x256xf32> to vector<8x256xbf16>
    %cst_13 = arith.constant dense<0.000000e+00> : vector<8x256xf32>
    %97 = tpu.matmul %95, %96, %cst_13 {dimension_numbers = #tpu.dot_dimension_numbers<[1], [0], [0], [1], [0, 0, 1, 1], [], []>} : vector<8x8xbf16>, vector<8x256xbf16>, vector<8x256xf32> -> vector<8x256xf32>
    %98 = arith.addf %93, %97 : vector<8x256xf32>
    %c2 = arith.constant 2 : index
    %c0_14 = arith.constant 0 : index
    %c0_15 = arith.constant 0 : index
    %99 = vector.load %arg3[%c2, %c0_14, %c0_15] : memref<9x8x8xbf16, #tpu.memory_space<vmem>>, vector<1x8x8xbf16>
    %100 = vector.shape_cast %99 : vector<1x8x8xbf16> to vector<8x8xbf16>
    %101 = arith.truncf %60 : vector<8x256xf32> to vector<8x256xbf16>
    %cst_16 = arith.constant dense<0.000000e+00> : vector<8x256xf32>
    %102 = tpu.matmul %100, %101, %cst_16 {dimension_numbers = #tpu.dot_dimension_numbers<[1], [0], [0], [1], [0, 0, 1, 1], [], []>} : vector<8x8xbf16>, vector<8x256xbf16>, vector<8x256xf32> -> vector<8x256xf32>
    %103 = arith.addf %98, %102 : vector<8x256xf32>
    %c3 = arith.constant 3 : index
    %c0_17 = arith.constant 0 : index
    %c0_18 = arith.constant 0 : index
    %104 = vector.load %arg3[%c3, %c0_17, %c0_18] : memref<9x8x8xbf16, #tpu.memory_space<vmem>>, vector<1x8x8xbf16>
    %105 = vector.shape_cast %104 : vector<1x8x8xbf16> to vector<8x8xbf16>
    %106 = arith.truncf %24 : vector<8x256xf32> to vector<8x256xbf16>
    %cst_19 = arith.constant dense<0.000000e+00> : vector<8x256xf32>
    %107 = tpu.matmul %105, %106, %cst_19 {dimension_numbers = #tpu.dot_dimension_numbers<[1], [0], [0], [1], [0, 0, 1, 1], [], []>} : vector<8x8xbf16>, vector<8x256xbf16>, vector<8x256xf32> -> vector<8x256xf32>
    %108 = arith.addf %103, %107 : vector<8x256xf32>
    %c4 = arith.constant 4 : index
    %c0_20 = arith.constant 0 : index
    %c0_21 = arith.constant 0 : index
    %109 = vector.load %arg3[%c4, %c0_20, %c0_21] : memref<9x8x8xbf16, #tpu.memory_space<vmem>>, vector<1x8x8xbf16>
    %110 = vector.shape_cast %109 : vector<1x8x8xbf16> to vector<8x8xbf16>
    %111 = arith.truncf %15 : vector<8x256xf32> to vector<8x256xbf16>
    %cst_22 = arith.constant dense<0.000000e+00> : vector<8x256xf32>
    %112 = tpu.matmul %110, %111, %cst_22 {dimension_numbers = #tpu.dot_dimension_numbers<[1], [0], [0], [1], [0, 0, 1, 1], [], []>} : vector<8x8xbf16>, vector<8x256xbf16>, vector<8x256xf32> -> vector<8x256xf32>
    %113 = arith.addf %108, %112 : vector<8x256xf32>
    %c5 = arith.constant 5 : index
    %c0_23 = arith.constant 0 : index
    %c0_24 = arith.constant 0 : index
    %114 = vector.load %arg3[%c5, %c0_23, %c0_24] : memref<9x8x8xbf16, #tpu.memory_space<vmem>>, vector<1x8x8xbf16>
    %115 = vector.shape_cast %114 : vector<1x8x8xbf16> to vector<8x8xbf16>
    %116 = arith.truncf %33 : vector<8x256xf32> to vector<8x256xbf16>
    %cst_25 = arith.constant dense<0.000000e+00> : vector<8x256xf32>
    %117 = tpu.matmul %115, %116, %cst_25 {dimension_numbers = #tpu.dot_dimension_numbers<[1], [0], [0], [1], [0, 0, 1, 1], [], []>} : vector<8x8xbf16>, vector<8x256xbf16>, vector<8x256xf32> -> vector<8x256xf32>
    %118 = arith.addf %113, %117 : vector<8x256xf32>
    %c6 = arith.constant 6 : index
    %c0_26 = arith.constant 0 : index
    %c0_27 = arith.constant 0 : index
    %119 = vector.load %arg3[%c6, %c0_26, %c0_27] : memref<9x8x8xbf16, #tpu.memory_space<vmem>>, vector<1x8x8xbf16>
    %120 = vector.shape_cast %119 : vector<1x8x8xbf16> to vector<8x8xbf16>
    %121 = arith.truncf %69 : vector<8x256xf32> to vector<8x256xbf16>
    %cst_28 = arith.constant dense<0.000000e+00> : vector<8x256xf32>
    %122 = tpu.matmul %120, %121, %cst_28 {dimension_numbers = #tpu.dot_dimension_numbers<[1], [0], [0], [1], [0, 0, 1, 1], [], []>} : vector<8x8xbf16>, vector<8x256xbf16>, vector<8x256xf32> -> vector<8x256xf32>
    %123 = arith.addf %118, %122 : vector<8x256xf32>
    %c7 = arith.constant 7 : index
    %c0_29 = arith.constant 0 : index
    %c0_30 = arith.constant 0 : index
    %124 = vector.load %arg3[%c7, %c0_29, %c0_30] : memref<9x8x8xbf16, #tpu.memory_space<vmem>>, vector<1x8x8xbf16>
    %125 = vector.shape_cast %124 : vector<1x8x8xbf16> to vector<8x8xbf16>
    %126 = arith.truncf %78 : vector<8x256xf32> to vector<8x256xbf16>
    %cst_31 = arith.constant dense<0.000000e+00> : vector<8x256xf32>
    %127 = tpu.matmul %125, %126, %cst_31 {dimension_numbers = #tpu.dot_dimension_numbers<[1], [0], [0], [1], [0, 0, 1, 1], [], []>} : vector<8x8xbf16>, vector<8x256xbf16>, vector<8x256xf32> -> vector<8x256xf32>
    %128 = arith.addf %123, %127 : vector<8x256xf32>
    %c8 = arith.constant 8 : index
    %c0_32 = arith.constant 0 : index
    %c0_33 = arith.constant 0 : index
    %129 = vector.load %arg3[%c8, %c0_32, %c0_33] : memref<9x8x8xbf16, #tpu.memory_space<vmem>>, vector<1x8x8xbf16>
    %130 = vector.shape_cast %129 : vector<1x8x8xbf16> to vector<8x8xbf16>
    %131 = arith.truncf %87 : vector<8x256xf32> to vector<8x256xbf16>
    %cst_34 = arith.constant dense<0.000000e+00> : vector<8x256xf32>
    %132 = tpu.matmul %130, %131, %cst_34 {dimension_numbers = #tpu.dot_dimension_numbers<[1], [0], [0], [1], [0, 0, 1, 1], [], []>} : vector<8x8xbf16>, vector<8x256xbf16>, vector<8x256xf32> -> vector<8x256xf32>
    %133 = arith.addf %128, %132 : vector<8x256xf32>
    %c0_35 = arith.constant 0 : index
    %c0_36 = arith.constant 0 : index
    %134 = vector.load %arg4[%c0_35, %c0_36] : memref<8x1xf32, #tpu.memory_space<vmem>>, vector<8x1xf32>
    %135 = vector.broadcast %134 : vector<8x1xf32> to vector<8x256xf32>
    %136 = arith.addf %133, %135 : vector<8x256xf32>
    %cst_37 = arith.constant 0.000000e+00 : f32
    %137 = vector.broadcast %cst_37 : f32 to vector<8x256xf32>
    %138 = arith.cmpf oge, %136, %137 : vector<8x256xf32>
    %cst_38 = arith.constant 2.000000e-01 : f32
    %139 = vector.broadcast %cst_38 : f32 to vector<8x256xf32>
    %140 = arith.mulf %139, %136 : vector<8x256xf32>
    %141 = arith.select %138, %136, %140 : vector<8x256xi1>, vector<8x256xf32>
    %142 = vector.extract_strided_slice %141 {offsets = [0, 1], sizes = [8, 255], strides = [1, 1]} : vector<8x256xf32> to vector<8x255xf32>
    %143 = vector.extract_strided_slice %141 {offsets = [0, 0], sizes = [8, 1], strides = [1, 1]} : vector<8x256xf32> to vector<8x1xf32>
    %144 = tpu.concatenate %142, %143 in 1 : vector<8x255xf32>, vector<8x1xf32> -> vector<8x256xf32>
    %145 = vector.extract_strided_slice %141 {offsets = [0, 255], sizes = [8, 1], strides = [1, 1]} : vector<8x256xf32> to vector<8x1xf32>
    %146 = vector.extract_strided_slice %141 {offsets = [0, 0], sizes = [8, 255], strides = [1, 1]} : vector<8x256xf32> to vector<8x255xf32>
    %147 = tpu.concatenate %145, %146 in 1 : vector<8x1xf32>, vector<8x255xf32> -> vector<8x256xf32>
    %148 = vector.shape_cast %3 : vector<1x256xi1> to vector<1x256xi1>
    %149 = vector.broadcast %148 : vector<1x256xi1> to vector<8x256xi1>
    %150 = arith.select %149, %144, %147 : vector<8x256xi1>, vector<8x256xf32>
    %151 = vector.extract_strided_slice %141 {offsets = [0, 255], sizes = [8, 1], strides = [1, 1]} : vector<8x256xf32> to vector<8x1xf32>
    %152 = vector.extract_strided_slice %141 {offsets = [0, 0], sizes = [8, 255], strides = [1, 1]} : vector<8x256xf32> to vector<8x255xf32>
    %153 = tpu.concatenate %151, %152 in 1 : vector<8x1xf32>, vector<8x255xf32> -> vector<8x256xf32>
    %154 = vector.extract_strided_slice %141 {offsets = [0, 1], sizes = [8, 255], strides = [1, 1]} : vector<8x256xf32> to vector<8x255xf32>
    %155 = vector.extract_strided_slice %141 {offsets = [0, 0], sizes = [8, 1], strides = [1, 1]} : vector<8x256xf32> to vector<8x1xf32>
    %156 = tpu.concatenate %154, %155 in 1 : vector<8x255xf32>, vector<8x1xf32> -> vector<8x256xf32>
    %157 = vector.shape_cast %6 : vector<1x256xi1> to vector<1x256xi1>
    %158 = vector.broadcast %157 : vector<1x256xi1> to vector<8x256xi1>
    %159 = arith.select %158, %153, %156 : vector<8x256xi1>, vector<8x256xf32>
    %160 = vector.extract_strided_slice %150 {offsets = [0, 16], sizes = [8, 240], strides = [1, 1]} : vector<8x256xf32> to vector<8x240xf32>
    %161 = vector.extract_strided_slice %150 {offsets = [0, 0], sizes = [8, 16], strides = [1, 1]} : vector<8x256xf32> to vector<8x16xf32>
    %162 = tpu.concatenate %160, %161 in 1 : vector<8x240xf32>, vector<8x16xf32> -> vector<8x256xf32>
    %163 = vector.extract_strided_slice %150 {offsets = [0, 240], sizes = [8, 16], strides = [1, 1]} : vector<8x256xf32> to vector<8x16xf32>
    %164 = vector.extract_strided_slice %150 {offsets = [0, 0], sizes = [8, 240], strides = [1, 1]} : vector<8x256xf32> to vector<8x240xf32>
    %165 = tpu.concatenate %163, %164 in 1 : vector<8x16xf32>, vector<8x240xf32> -> vector<8x256xf32>
    %166 = vector.shape_cast %9 : vector<1x256xi1> to vector<1x256xi1>
    %167 = vector.broadcast %166 : vector<1x256xi1> to vector<8x256xi1>
    %168 = arith.select %167, %162, %165 : vector<8x256xi1>, vector<8x256xf32>
    %169 = vector.extract_strided_slice %141 {offsets = [0, 16], sizes = [8, 240], strides = [1, 1]} : vector<8x256xf32> to vector<8x240xf32>
    %170 = vector.extract_strided_slice %141 {offsets = [0, 0], sizes = [8, 16], strides = [1, 1]} : vector<8x256xf32> to vector<8x16xf32>
    %171 = tpu.concatenate %169, %170 in 1 : vector<8x240xf32>, vector<8x16xf32> -> vector<8x256xf32>
    %172 = vector.extract_strided_slice %141 {offsets = [0, 240], sizes = [8, 16], strides = [1, 1]} : vector<8x256xf32> to vector<8x16xf32>
    %173 = vector.extract_strided_slice %141 {offsets = [0, 0], sizes = [8, 240], strides = [1, 1]} : vector<8x256xf32> to vector<8x240xf32>
    %174 = tpu.concatenate %172, %173 in 1 : vector<8x16xf32>, vector<8x240xf32> -> vector<8x256xf32>
    %175 = vector.shape_cast %9 : vector<1x256xi1> to vector<1x256xi1>
    %176 = vector.broadcast %175 : vector<1x256xi1> to vector<8x256xi1>
    %177 = arith.select %176, %171, %174 : vector<8x256xi1>, vector<8x256xf32>
    %178 = vector.extract_strided_slice %159 {offsets = [0, 16], sizes = [8, 240], strides = [1, 1]} : vector<8x256xf32> to vector<8x240xf32>
    %179 = vector.extract_strided_slice %159 {offsets = [0, 0], sizes = [8, 16], strides = [1, 1]} : vector<8x256xf32> to vector<8x16xf32>
    %180 = tpu.concatenate %178, %179 in 1 : vector<8x240xf32>, vector<8x16xf32> -> vector<8x256xf32>
    %181 = vector.extract_strided_slice %159 {offsets = [0, 240], sizes = [8, 16], strides = [1, 1]} : vector<8x256xf32> to vector<8x16xf32>
    %182 = vector.extract_strided_slice %159 {offsets = [0, 0], sizes = [8, 240], strides = [1, 1]} : vector<8x256xf32> to vector<8x240xf32>
    %183 = tpu.concatenate %181, %182 in 1 : vector<8x16xf32>, vector<8x240xf32> -> vector<8x256xf32>
    %184 = vector.shape_cast %9 : vector<1x256xi1> to vector<1x256xi1>
    %185 = vector.broadcast %184 : vector<1x256xi1> to vector<8x256xi1>
    %186 = arith.select %185, %180, %183 : vector<8x256xi1>, vector<8x256xf32>
    %187 = vector.extract_strided_slice %150 {offsets = [0, 240], sizes = [8, 16], strides = [1, 1]} : vector<8x256xf32> to vector<8x16xf32>
    %188 = vector.extract_strided_slice %150 {offsets = [0, 0], sizes = [8, 240], strides = [1, 1]} : vector<8x256xf32> to vector<8x240xf32>
    %189 = tpu.concatenate %187, %188 in 1 : vector<8x16xf32>, vector<8x240xf32> -> vector<8x256xf32>
    %190 = vector.extract_strided_slice %150 {offsets = [0, 16], sizes = [8, 240], strides = [1, 1]} : vector<8x256xf32> to vector<8x240xf32>
    %191 = vector.extract_strided_slice %150 {offsets = [0, 0], sizes = [8, 16], strides = [1, 1]} : vector<8x256xf32> to vector<8x16xf32>
    %192 = tpu.concatenate %190, %191 in 1 : vector<8x240xf32>, vector<8x16xf32> -> vector<8x256xf32>
    %193 = vector.shape_cast %12 : vector<1x256xi1> to vector<1x256xi1>
    %194 = vector.broadcast %193 : vector<1x256xi1> to vector<8x256xi1>
    %195 = arith.select %194, %189, %192 : vector<8x256xi1>, vector<8x256xf32>
    %196 = vector.extract_strided_slice %141 {offsets = [0, 240], sizes = [8, 16], strides = [1, 1]} : vector<8x256xf32> to vector<8x16xf32>
    %197 = vector.extract_strided_slice %141 {offsets = [0, 0], sizes = [8, 240], strides = [1, 1]} : vector<8x256xf32> to vector<8x240xf32>
    %198 = tpu.concatenate %196, %197 in 1 : vector<8x16xf32>, vector<8x240xf32> -> vector<8x256xf32>
    %199 = vector.extract_strided_slice %141 {offsets = [0, 16], sizes = [8, 240], strides = [1, 1]} : vector<8x256xf32> to vector<8x240xf32>
    %200 = vector.extract_strided_slice %141 {offsets = [0, 0], sizes = [8, 16], strides = [1, 1]} : vector<8x256xf32> to vector<8x16xf32>
    %201 = tpu.concatenate %199, %200 in 1 : vector<8x240xf32>, vector<8x16xf32> -> vector<8x256xf32>
    %202 = vector.shape_cast %12 : vector<1x256xi1> to vector<1x256xi1>
    %203 = vector.broadcast %202 : vector<1x256xi1> to vector<8x256xi1>
    %204 = arith.select %203, %198, %201 : vector<8x256xi1>, vector<8x256xf32>
    %205 = vector.extract_strided_slice %159 {offsets = [0, 240], sizes = [8, 16], strides = [1, 1]} : vector<8x256xf32> to vector<8x16xf32>
    %206 = vector.extract_strided_slice %159 {offsets = [0, 0], sizes = [8, 240], strides = [1, 1]} : vector<8x256xf32> to vector<8x240xf32>
    %207 = tpu.concatenate %205, %206 in 1 : vector<8x16xf32>, vector<8x240xf32> -> vector<8x256xf32>
    %208 = vector.extract_strided_slice %159 {offsets = [0, 16], sizes = [8, 240], strides = [1, 1]} : vector<8x256xf32> to vector<8x240xf32>
    %209 = vector.extract_strided_slice %159 {offsets = [0, 0], sizes = [8, 16], strides = [1, 1]} : vector<8x256xf32> to vector<8x16xf32>
    %210 = tpu.concatenate %208, %209 in 1 : vector<8x240xf32>, vector<8x16xf32> -> vector<8x256xf32>
    %211 = vector.shape_cast %12 : vector<1x256xi1> to vector<1x256xi1>
    %212 = vector.broadcast %211 : vector<1x256xi1> to vector<8x256xi1>
    %213 = arith.select %212, %207, %210 : vector<8x256xi1>, vector<8x256xf32>
    %cst_39 = arith.constant 0.000000e+00 : f32
    %214 = vector.broadcast %cst_39 : f32 to vector<8x256xf32>
    %c0_40 = arith.constant 0 : index
    %c0_41 = arith.constant 0 : index
    %c0_42 = arith.constant 0 : index
    %215 = vector.load %arg5[%c0_40, %c0_41, %c0_42] : memref<9x8x8xbf16, #tpu.memory_space<vmem>>, vector<1x8x8xbf16>
    %216 = vector.shape_cast %215 : vector<1x8x8xbf16> to vector<8x8xbf16>
    %217 = arith.truncf %168 : vector<8x256xf32> to vector<8x256xbf16>
    %cst_43 = arith.constant dense<0.000000e+00> : vector<8x256xf32>
    %218 = tpu.matmul %216, %217, %cst_43 {dimension_numbers = #tpu.dot_dimension_numbers<[1], [0], [0], [1], [0, 0, 1, 1], [], []>} : vector<8x8xbf16>, vector<8x256xbf16>, vector<8x256xf32> -> vector<8x256xf32>
    %219 = arith.addf %214, %218 : vector<8x256xf32>
    %c1_44 = arith.constant 1 : index
    %c0_45 = arith.constant 0 : index
    %c0_46 = arith.constant 0 : index
    %220 = vector.load %arg5[%c1_44, %c0_45, %c0_46] : memref<9x8x8xbf16, #tpu.memory_space<vmem>>, vector<1x8x8xbf16>
    %221 = vector.shape_cast %220 : vector<1x8x8xbf16> to vector<8x8xbf16>
    %222 = arith.truncf %177 : vector<8x256xf32> to vector<8x256xbf16>
    %cst_47 = arith.constant dense<0.000000e+00> : vector<8x256xf32>
    %223 = tpu.matmul %221, %222, %cst_47 {dimension_numbers = #tpu.dot_dimension_numbers<[1], [0], [0], [1], [0, 0, 1, 1], [], []>} : vector<8x8xbf16>, vector<8x256xbf16>, vector<8x256xf32> -> vector<8x256xf32>
    %224 = arith.addf %219, %223 : vector<8x256xf32>
    %c2_48 = arith.constant 2 : index
    %c0_49 = arith.constant 0 : index
    %c0_50 = arith.constant 0 : index
    %225 = vector.load %arg5[%c2_48, %c0_49, %c0_50] : memref<9x8x8xbf16, #tpu.memory_space<vmem>>, vector<1x8x8xbf16>
    %226 = vector.shape_cast %225 : vector<1x8x8xbf16> to vector<8x8xbf16>
    %227 = arith.truncf %186 : vector<8x256xf32> to vector<8x256xbf16>
    %cst_51 = arith.constant dense<0.000000e+00> : vector<8x256xf32>
    %228 = tpu.matmul %226, %227, %cst_51 {dimension_numbers = #tpu.dot_dimension_numbers<[1], [0], [0], [1], [0, 0, 1, 1], [], []>} : vector<8x8xbf16>, vector<8x256xbf16>, vector<8x256xf32> -> vector<8x256xf32>
    %229 = arith.addf %224, %228 : vector<8x256xf32>
    %c3_52 = arith.constant 3 : index
    %c0_53 = arith.constant 0 : index
    %c0_54 = arith.constant 0 : index
    %230 = vector.load %arg5[%c3_52, %c0_53, %c0_54] : memref<9x8x8xbf16, #tpu.memory_space<vmem>>, vector<1x8x8xbf16>
    %231 = vector.shape_cast %230 : vector<1x8x8xbf16> to vector<8x8xbf16>
    %232 = arith.truncf %150 : vector<8x256xf32> to vector<8x256xbf16>
    %cst_55 = arith.constant dense<0.000000e+00> : vector<8x256xf32>
    %233 = tpu.matmul %231, %232, %cst_55 {dimension_numbers = #tpu.dot_dimension_numbers<[1], [0], [0], [1], [0, 0, 1, 1], [], []>} : vector<8x8xbf16>, vector<8x256xbf16>, vector<8x256xf32> -> vector<8x256xf32>
    %234 = arith.addf %229, %233 : vector<8x256xf32>
    %c4_56 = arith.constant 4 : index
    %c0_57 = arith.constant 0 : index
    %c0_58 = arith.constant 0 : index
    %235 = vector.load %arg5[%c4_56, %c0_57, %c0_58] : memref<9x8x8xbf16, #tpu.memory_space<vmem>>, vector<1x8x8xbf16>
    %236 = vector.shape_cast %235 : vector<1x8x8xbf16> to vector<8x8xbf16>
    %237 = arith.truncf %141 : vector<8x256xf32> to vector<8x256xbf16>
    %cst_59 = arith.constant dense<0.000000e+00> : vector<8x256xf32>
    %238 = tpu.matmul %236, %237, %cst_59 {dimension_numbers = #tpu.dot_dimension_numbers<[1], [0], [0], [1], [0, 0, 1, 1], [], []>} : vector<8x8xbf16>, vector<8x256xbf16>, vector<8x256xf32> -> vector<8x256xf32>
    %239 = arith.addf %234, %238 : vector<8x256xf32>
    %c5_60 = arith.constant 5 : index
    %c0_61 = arith.constant 0 : index
    %c0_62 = arith.constant 0 : index
    %240 = vector.load %arg5[%c5_60, %c0_61, %c0_62] : memref<9x8x8xbf16, #tpu.memory_space<vmem>>, vector<1x8x8xbf16>
    %241 = vector.shape_cast %240 : vector<1x8x8xbf16> to vector<8x8xbf16>
    %242 = arith.truncf %159 : vector<8x256xf32> to vector<8x256xbf16>
    %cst_63 = arith.constant dense<0.000000e+00> : vector<8x256xf32>
    %243 = tpu.matmul %241, %242, %cst_63 {dimension_numbers = #tpu.dot_dimension_numbers<[1], [0], [0], [1], [0, 0, 1, 1], [], []>} : vector<8x8xbf16>, vector<8x256xbf16>, vector<8x256xf32> -> vector<8x256xf32>
    %244 = arith.addf %239, %243 : vector<8x256xf32>
    %c6_64 = arith.constant 6 : index
    %c0_65 = arith.constant 0 : index
    %c0_66 = arith.constant 0 : index
    %245 = vector.load %arg5[%c6_64, %c0_65, %c0_66] : memref<9x8x8xbf16, #tpu.memory_space<vmem>>, vector<1x8x8xbf16>
    %246 = vector.shape_cast %245 : vector<1x8x8xbf16> to vector<8x8xbf16>
    %247 = arith.truncf %195 : vector<8x256xf32> to vector<8x256xbf16>
    %cst_67 = arith.constant dense<0.000000e+00> : vector<8x256xf32>
    %248 = tpu.matmul %246, %247, %cst_67 {dimension_numbers = #tpu.dot_dimension_numbers<[1], [0], [0], [1], [0, 0, 1, 1], [], []>} : vector<8x8xbf16>, vector<8x256xbf16>, vector<8x256xf32> -> vector<8x256xf32>
    %249 = arith.addf %244, %248 : vector<8x256xf32>
    %c7_68 = arith.constant 7 : index
    %c0_69 = arith.constant 0 : index
    %c0_70 = arith.constant 0 : index
    %250 = vector.load %arg5[%c7_68, %c0_69, %c0_70] : memref<9x8x8xbf16, #tpu.memory_space<vmem>>, vector<1x8x8xbf16>
    %251 = vector.shape_cast %250 : vector<1x8x8xbf16> to vector<8x8xbf16>
    %252 = arith.truncf %204 : vector<8x256xf32> to vector<8x256xbf16>
    %cst_71 = arith.constant dense<0.000000e+00> : vector<8x256xf32>
    %253 = tpu.matmul %251, %252, %cst_71 {dimension_numbers = #tpu.dot_dimension_numbers<[1], [0], [0], [1], [0, 0, 1, 1], [], []>} : vector<8x8xbf16>, vector<8x256xbf16>, vector<8x256xf32> -> vector<8x256xf32>
    %254 = arith.addf %249, %253 : vector<8x256xf32>
    %c8_72 = arith.constant 8 : index
    %c0_73 = arith.constant 0 : index
    %c0_74 = arith.constant 0 : index
    %255 = vector.load %arg5[%c8_72, %c0_73, %c0_74] : memref<9x8x8xbf16, #tpu.memory_space<vmem>>, vector<1x8x8xbf16>
    %256 = vector.shape_cast %255 : vector<1x8x8xbf16> to vector<8x8xbf16>
    %257 = arith.truncf %213 : vector<8x256xf32> to vector<8x256xbf16>
    %cst_75 = arith.constant dense<0.000000e+00> : vector<8x256xf32>
    %258 = tpu.matmul %256, %257, %cst_75 {dimension_numbers = #tpu.dot_dimension_numbers<[1], [0], [0], [1], [0, 0, 1, 1], [], []>} : vector<8x8xbf16>, vector<8x256xbf16>, vector<8x256xf32> -> vector<8x256xf32>
    %259 = arith.addf %254, %258 : vector<8x256xf32>
    %c0_76 = arith.constant 0 : index
    %c0_77 = arith.constant 0 : index
    %260 = vector.load %arg6[%c0_76, %c0_77] : memref<8x1xf32, #tpu.memory_space<vmem>>, vector<8x1xf32>
    %261 = vector.broadcast %260 : vector<8x1xf32> to vector<8x256xf32>
    %262 = arith.addf %259, %261 : vector<8x256xf32>
    %cst_78 = arith.constant 0.000000e+00 : f32
    %263 = vector.broadcast %cst_78 : f32 to vector<8x256xf32>
    %264 = arith.cmpf oge, %262, %263 : vector<8x256xf32>
    %cst_79 = arith.constant 2.000000e-01 : f32
    %265 = vector.broadcast %cst_79 : f32 to vector<8x256xf32>
    %266 = arith.mulf %265, %262 : vector<8x256xf32>
    %267 = arith.select %264, %262, %266 : vector<8x256xi1>, vector<8x256xf32>
    %c0_80 = arith.constant 0 : index
    %c0_81 = arith.constant 0 : index
    %c0_82 = arith.constant 0 : index
    %268 = vector.load %arg7[%c0_80, %c0_81, %c0_82] : memref<1x8x256xf32, #tpu.memory_space<vmem>>, vector<1x8x256xf32>
    %269 = vector.shape_cast %268 : vector<1x8x256xf32> to vector<8x256xf32>
    %270 = vector.shape_cast %267 : vector<8x256xf32> to vector<1x8x256xf32>
    tpu.vector_store %arg7[%c0_80, %c0_81, %c0_82], %270 {strides = array<i32>} : memref<1x8x256xf32, #tpu.memory_space<vmem>>, vector<1x8x256xf32>,
    return
  }
  func.func @transform_0(%arg0: i32) -> (i32, i32, i32) {
    %c0_i32 = arith.constant 0 : i32
    %c0_i32_0 = arith.constant 0 : i32
    %c0_i32_1 = arith.constant 0 : i32
    return %arg0, %c0_i32, %c0_i32_0 : i32, i32, i32
  }
  func.func @transform_1(%arg0: i32) -> (i32, i32) {
    %c0_i32 = arith.constant 0 : i32
    %c0_i32_0 = arith.constant 0 : i32
    %c0_i32_1 = arith.constant 0 : i32
    return %c0_i32, %c0_i32_0 : i32, i32
  }
  func.func @transform_2(%arg0: i32) -> (i32, i32, i32) {
    %c0_i32 = arith.constant 0 : i32
    %c0_i32_0 = arith.constant 0 : i32
    %c0_i32_1 = arith.constant 0 : i32
    %c0_i32_2 = arith.constant 0 : i32
    return %c0_i32, %c0_i32_0, %c0_i32_1 : i32, i32, i32
  }
  func.func @transform_3(%arg0: i32) -> (i32, i32) {
    %c0_i32 = arith.constant 0 : i32
    %c0_i32_0 = arith.constant 0 : i32
    %c0_i32_1 = arith.constant 0 : i32
    return %c0_i32, %c0_i32_0 : i32, i32
  }
  func.func @transform_4(%arg0: i32) -> (i32, i32, i32) {
    %c0_i32 = arith.constant 0 : i32
    %c0_i32_0 = arith.constant 0 : i32
    %c0_i32_1 = arith.constant 0 : i32
    %c0_i32_2 = arith.constant 0 : i32
    return %c0_i32, %c0_i32_0, %c0_i32_1 : i32, i32, i32
  }
  func.func @transform_5(%arg0: i32) -> (i32, i32) {
    %c0_i32 = arith.constant 0 : i32
    %c0_i32_0 = arith.constant 0 : i32
    %c0_i32_1 = arith.constant 0 : i32
    return %c0_i32, %c0_i32_0 : i32, i32
  }
  func.func @transform_6(%arg0: i32) -> (i32, i32, i32) {
    %c0_i32 = arith.constant 0 : i32
    %c0_i32_0 = arith.constant 0 : i32
    %c0_i32_1 = arith.constant 0 : i32
    return %arg0, %c0_i32, %c0_i32_0 : i32, i32, i32
  }
}

</mosaic_0001>

<bundles_post_ra>
// kernel: up_forward.2
= control target key start
LH: loop header
LB: loop body
LE: loop exit
PB: predicated region body
PF: predicated region fallthrough
CT: control target
= control target key end

     0   :  { %11 = vsyncpa [#allocation3], 0  ;;  %s2303_s0 = inlined_call_operand.hbm [shape: f32[2,4,8,8], index: 0, kind: input, shape index: {}]   ;;  %s2304_s1 = inlined_call_operand.hbm [shape: f32[2,6,16,16], index: 1, kind: input, shape index: {}]   ;;  %s2305_s2 = inlined_call_operand.vmem [shape: f32[16,8], index: 2, kind: input, shape index: {}]   ;;  %s2306_s3 = inlined_call_operand.vmem [shape: f32[8,16], index: 3, kind: input, shape index: {}]   ;;  %s2307_s4 = inlined_call_operand.vmem [shape: f32[4,6], index: 4, kind: input, shape index: {}]   ;;  %s2308_s5 = inlined_call_operand.vmem [shape: f32[4], index: 5, kind: input, shape index: {}]   ;;  %s2309_s6 = inlined_call_operand.vmem [shape: bf16[2,8,16,16], index: 6, kind: output, shape index: {}]  }
   0x1   :  { %13 = vsyncpa [#allocation3 + $0x1], 0 }
   0x2   :  { %14 = vsyncpa [#allocation6], 0 }
   0x3   :  { %16 = vsyncpa [#allocation6 + $0x1], 0 }
   0x4   :  { %17 = vsyncpa [#allocation4], 0 }
   0x5   :  { %18 = vsyncpa [#allocation9], 0  ;;  %s1872_s21 = smov 0   ;;  %s1874_s22 = smov 0  }
   0x6   :  { %s1876_s23 = smov 0   ;;  %s1878_s24 = smov 0  }
   0x7 LB: > { %s1891_s25 = sadd.s32 4294967295, %s1829_s24   ;;  %s1894_s26 = sadd.s32 1, %s1829_s24   ;;  %s1829_s24 = sphi %s1878_s24, %s2329_s24   ;;  %s1825_s23 = sphi %s1876_s23, %s2328_s23   ;;  %s1821_s22 = sphi %s1874_s22, %s2327_s22   ;;  %s1817_s21 = sphi %s1872_s21, %s2326_s21  }
   0x8   : > { %s28_s27 = ssub.s32 %s1829_s24, %s1894_s26  ;;  %s31_s28 = sadd.s32 1, %s1825_s23 }
   0x9   : > { %p29_p0 = scmp.eq.s32.totalorder %s28_s27, 0  ;;  %p38_p1 = scmp.ne.s32.totalorder %s1825_s23, %s1821_s22 }
   0xa   : > { %p39_p2 = scmp.eq.s32.totalorder %s1829_s24, 0  ;;  %p44_p3 = scmp.ne.s32.totalorder %s1821_s22, %s1817_s21 }
   0xb   : > { %s1904_s29 = scalar_select %p29_p0, %s1825_s23, %s31_s28  }
   0xc   : > { %p1906_p4 = por %p39_p2, %p38_p1  ;;  %p2310_p5 = scmp.eq.s32.totalorder %s1891_s25, 0 }
   0xd   : > { %p1410_p6 = scmp.ge.s32.totalorder %s1829_s24, 1  ;;  %p191_p7 = scmp.lt.s32.totalorder %s1829_s24, 3 }
   0xe   : > { %p1915_p8 = por %p2310_p5, %p44_p3  ;;  %s210_s11 = sshll.u32 %s2307_s4, 4  ;;  %s211_s11 = int_to_ptr.vmem [resolvable:$true] %s210_s11 }
   0xf   : > { %p1919_p9 = pnand %p1410_p6, %p191_p7  ;;  %p1654_p11 = scmp.lt.s32.totalorder %s1829_s24, 2 }
  0x10   : > { %s2315_s7 = scalar_select %p1915_p8, 1, 0 }
  0x11   : > { %s2316_s8 = scalar_select %p1919_p9, 1, 0 }
  0x12   : > { %p1638_p10 = pneg %p1919_p9  ;;  %s221_s14 = sshll.u32 %s2308_s5, 4  ;;  %s222_s14 = int_to_ptr.vmem [resolvable:$true] %s221_s14 }
  0x13   : > { %p1940_p13 = pnand %p1654_p11, %p1906_p4  ;;  %s1945_s17 = sand.u32 1, %s1825_s23  }
  0x14   : > { %p1934_p12 = pnand %p1638_p10, %p2310_p5  ;;  %s1693_s18 = scalar_lea.vmem %s211_s11, 64 }
  0x15   : > { %s2318_s16 = scalar_select %p1940_p13, 1, 0 }
  0x16   : > { %p1694_p0 = scmp.ne.s32.totalorder %s211_s11, %s1693_s18  ;;  %p1695_p1 = pneg %p1934_p12 }
  0x17   : > { %p1701_p6 = scmp.lt.s32.totalorder %s211_s11, %s211_s11  ;;  %p1702_p7 = scmp.lt.s32.totalorder %s1693_s18, %s1693_s18 }
  0x18   : > { %p1696_p2 = pnand %p1695_p1, %p1694_p0 }
  0x19   : > { %p1703_p10 = por %p1702_p7, %p1701_p6 }
  0x1a   : > { %p1697_p3 = pneg %p1696_p2 }
  0x1c   : > { %p1704_p5 = pnand %p1703_p10, %p1697_p3 }
  0x1e   : > { %1707 = shalt.err (!%p1704_p5)
}
  0x1f   : > { %s1831_s19 = smov [#allocation7]   ;;  %s1708_s20 = scalar_lea.vmem %s222_s14, 16 }
  0x20   : > { %1641 = dma.vmem_to_smem (!%p1934_p12), %s211_s11, 64, %s1831_s19, [#allocation4]  }
  0x21   : > { %p1709_p4 = scmp.ne.s32.totalorder %s222_s14, %s1708_s20  ;;  %p1716_p9 = scmp.lt.s32.totalorder %s222_s14, %s222_s14 }
  0x22   : > { %p1717_p13 = scmp.lt.s32.totalorder %s1708_s20, %s1708_s20 }
  0x23   : > { %p1711_p11 = pnand %p1709_p4, %p1695_p1 }
  0x24   : > { %p1718_p0 = por %p1717_p13, %p1716_p9 }
  0x25   : > { %p1712_p8 = pneg %p1711_p11 }
  0x27   : > { %p1719_p2 = pnand %p1718_p0, %p1712_p8 }
  0x29   : > { %1722 = shalt.err (!%p1719_p2)
}
  0x2a   : > { %s1832_s21 = smov [#allocation8]   ;;  %s1414_s27 = sshll.u32 %s1945_s17, 5 }
  0x2b   : > { %1644 = dma.vmem_to_smem (!%p1934_p12), %s222_s14, 16, %s1832_s21, [#allocation9]  }
  0x2c   : > { %s1541_s28 = sshll.u32 %s1829_s24, 9  ;;  %s236_s11 = scalar_lea.vmem [#allocation2], %s1414_s27 }
  0x2d   : > { %s1958_s10 = scalar_lea.hbm %s2303_s0, %s1541_s28  ;;  %s243_s12 = sshll.u32 %s236_s11, 4  ;;  %s1960_s12 = int_to_ptr.vmem [resolvable:$true] %s243_s12 }
  0x2e   : > { %s233_s13 = scalar_lea.sflag [#allocation3], %s1945_s17  ;;  %s1723_s15 = scalar_lea.hbm %s1958_s10, 512 }
  0x2f   : > { %p1724_p5 = scmp.ne.s32.totalorder %s1958_s10, %s1723_s15  ;;  %p2319_p8 = scmp.ne.s32.totalorder %s2318_s16, 0 }
  0x30   : > { %s1728_s19 = scalar_lea.hbm %s2303_s0, 1024  ;;  %p1729_p1 = scmp.lt.u32.totalorder %s1958_s10, %s2303_s0 }
  0x31   : > { %p1725_p9 = pneg %p2319_p8  ;;  %p1730_p3 = scmp.lt.u32.totalorder %s1728_s19, %s1723_s15 }
  0x32   : > { %p1732_p7 = scmp.lt.u32.totalorder %s1723_s15, %s1958_s10 }
  0x33   : > { %p1726_p12 = pnand %p1725_p9, %p1724_p5  ;;  %p1731_p6 = por %p1730_p3, %p1729_p1 }
  0x35   : > { %p1727_p13 = pneg %p1726_p12  ;;  %p1733_p10 = por %p1732_p7, %p1731_p6 }
  0x37   : > { %p1734_p4 = pnand %p1733_p10, %p1727_p13 }
  0x39   : > { %1737 = shalt.err (!%p1734_p4)
}
  0x3a   : > { %s1738_s27 = scalar_lea.vmem %s1960_s12, 512  ;;  %s1833_s28 = smov [#allocation2]  }
  0x3b   : > { %p1739_p11 = scmp.ne.s32.totalorder %s1960_s12, %s1738_s27  ;;  %s1743_s30 = sshll.u32 %s1833_s28, 4  ;;  %s1744_s30 = int_to_ptr.vmem [resolvable:$false] %s1743_s30 }
  0x3c   : > { %s1745_s9 = scalar_lea.vmem %s1744_s30, 1024  ;;  %p1746_p5 = scmp.lt.s32.totalorder %s1960_s12, %s1744_s30 }
  0x3d   : > { %p1741_p0 = pnand %p1739_p11, %p1725_p9  ;;  %p1747_p12 = scmp.lt.s32.totalorder %s1745_s9, %s1738_s27 }
  0x3f   : > { %p1742_p2 = pneg %p1741_p0  ;;  %p1748_p1 = por %p1747_p12, %p1746_p5 }
  0x41   : > { %p1749_p3 = pnand %p1748_p1, %p1742_p2 }
  0x43   : > { %1752 = shalt.err (!%p1749_p3)
}
  0x44   : > { %s1834_s11 = smov 128   ;;  %s1835_s15 = smov 8  }
  0x45   : > { %1648 = dma.hbm_to_vmem [thread:$0]  (!%p2319_p8), %s1958_s10, 512, %s1960_s12, %s233_s13, %s1834_s11, %s1834_s11, %s1835_s15  }
  0x46   : > { %s1623_s14 = smul.u32 96, %s1945_s17  ;;  %s254_s30 = scalar_lea.sflag [#allocation6], %s1945_s17 }
  0x47   : > { %s1624_s18 = smul.u32 1536, %s1829_s24  ;;  %s1758_s12 = scalar_lea.hbm %s2304_s1, 3072 }
  0x48   : > { %s257_s27 = scalar_lea.vmem [#allocation5], %s1623_s14 }
  0x49   : > { %s1998_s21 = scalar_lea.hbm %s2304_s1, %s1624_s18  ;;  %s264_s28 = sshll.u32 %s257_s27, 4  ;;  %s2000_s28 = int_to_ptr.vmem [resolvable:$true] %s264_s28 }
  0x4a   : > { %s1753_s9 = scalar_lea.hbm %s1998_s21, 1536  ;;  %p1759_p10 = scmp.lt.u32.totalorder %s1998_s21, %s2304_s1 }
  0x4b   : > { %p1754_p13 = scmp.ne.s32.totalorder %s1998_s21, %s1753_s9  ;;  %p1760_p4 = scmp.lt.u32.totalorder %s1758_s12, %s1753_s9 }
  0x4c   : > { %p1762_p0 = scmp.lt.u32.totalorder %s1753_s9, %s1998_s21 }
  0x4d   : > { %p1756_p6 = pnand %p1754_p13, %p1725_p9  ;;  %p1761_p11 = por %p1760_p4, %p1759_p10 }
  0x4f   : > { %p1757_p7 = pneg %p1756_p6  ;;  %p1763_p2 = por %p1762_p0, %p1761_p11 }
  0x51   : > { %p1764_p5 = pnand %p1763_p2, %p1757_p7 }
  0x53   : > { %1767 = shalt.err (!%p1764_p5)
}
  0x54   : > { %s1768_s14 = scalar_lea.vmem %s2000_s28, 1536  ;;  %s1836_s19 = smov [#allocation5]  }
  0x55   : > { %p1769_p12 = scmp.ne.s32.totalorder %s2000_s28, %s1768_s14  ;;  %s1773_s20 = sshll.u32 %s1836_s19, 4  ;;  %s1774_s20 = int_to_ptr.vmem [resolvable:$false] %s1773_s20 }
  0x56   : > { %s1775_s27 = scalar_lea.vmem %s1774_s20, 3072  ;;  %p1776_p13 = scmp.lt.s32.totalorder %s2000_s28, %s1774_s20 }
  0x57   : > { %p1771_p1 = pnand %p1769_p12, %p1725_p9  ;;  %p1777_p6 = scmp.lt.s32.totalorder %s1775_s27, %s1768_s14 }
  0x59   : > { %p1772_p3 = pneg %p1771_p1  ;;  %p1778_p10 = por %p1777_p6, %p1776_p13 }
  0x5b   : > { %p1779_p4 = pnand %p1778_p10, %p1772_p3 }
  0x5d   : > { %1782 = shalt.err (!%p1779_p4)
}
  0x5e   : > { %1651 = dma.hbm_to_vmem [thread:$0]  (!%p2319_p8), %s1998_s21, 1536, %s2000_s28, %s254_s30, %s1834_s11, %s1834_s11, %s1835_s15  }
  0x5f   : > { %p2320_p9 = scmp.ne.s32.totalorder %s2316_s8, 0 }
  0x60   : > { %s278_s9 = sand.u32 (!%p2320_p9), 1, %s1821_s22   ;;  %p2321_p7 = scmp.ne.s32.totalorder (!%p2320_p9), %s2315_s7, 0 }
  0x61   : > { %276 = sbr.rel (%p2320_p9) target bundleno = 563 (0x233), region = 44  ;;  %s1419_s24 = sshll.u32 (!%p2320_p9), %s278_s9, 5 }
  0x62   : > { %s279_s10 = scalar_lea.sflag (!%p2320_p9), [#allocation3], %s278_s9  ;;  %s282_s12 = scalar_lea.vmem (!%p2320_p9), [#allocation2], %s1419_s24 }
  0x68   : > { %1800 = dma.done.wait (%p2321_p7), %s279_s10, 512  }
  0x69   : > { %1802 = vsyncadd (%p2321_p7), %s279_s10, 4294966784  ;;  %s1625_s16 = smul.u32 96, %s278_s9  ;;  %s288_s17 = scalar_lea.sflag [#allocation6], %s278_s9 }
  0x6b   : > { %s2038_s13 = scalar_lea.vmem [#allocation5], %s1625_s16 }
  0x6c   : > { %1804 = dma.done.wait (%p2321_p7), %s288_s17, 1536  }
  0x6d   : > { %1806 = vsyncadd (%p2321_p7), %s288_s17, 4294965760  ;;  %p2322_p8 = scmp.eq.s32.totalorder %s1891_s25, 0 }
  0x6f   : > { %1808 = dma.done.wait (%p2322_p8), [#allocation4], 64   ;;  %p2323_p11 = pmov %p2322_p8 }
  0x70   : > { %p2324_p0 = pmov %p2322_p8 }
  0x71   : > { %1810 = vsyncadd (%p2323_p11), [#allocation4], 4294967232 }
  0x72   : > { %1812 = dma.done.wait (%p2324_p0), [#allocation9], 16   ;;  %p2325_p2 = pmov %p2324_p0 }
  0x74   : > { %1814 = vsyncadd (%p2325_p2), [#allocation9], 4294967280 }
  0x75   : > { %304 = sfence }
  0x76   : > { %v615_v0 = vld [vmem:[%s282_s12] sm:$0xff]  ;;  %vm616_vm0 = vcmask 64512   ;;  %v613_v2 = vld [vmem:[%s2305_s2 + $0x8] sm:$0xff]  ;;  %v1521_v4 = vld [vmem:[%s282_s12 + $0x10] sm:$0xff]  ;;  %s339_s30 = sld [smem:[#allocation7]]  ;;  %s1424_s18 = sld [smem:[#allocation7 + $0x1]] }
  0x77   : > { %v612_v1 = vld [vmem:[%s2305_s2] sm:$0xff]  ;;  %1583 = vmatprep.subr.mxu0 %v615_v0  ;;  %v1512_v3 = vld [vmem:[%s282_s12 + $0x8] sm:$0xff]  ;;  %v1530_v5 = vld [vmem:[%s282_s12 + $0x18] sm:$0xff]  ;;  %s1427_s14 = sld [smem:[#allocation7 + $0x2]]  ;;  %s2074_s19 = sld [smem:[#allocation7 + $0x3]]  ;;  %vm408_vm1 = vcmask 125952  }
  0x78   : > { %1585 = vmatprep.mubr.msk.f32.mxu0 %vm616_vm0, %v612_v1  ;;  %1584 = vmatpush3.msra.mxu0 %v615_v0  ;;  %v2069_v6 = vld [vmem:[%s2306_s3] sm:$0xff]  ;;  %s2076_s20 = sld [smem:[#allocation7 + $0x4]]  ;;  %v2082_v8 = vld [vmem:[%s2038_s13 + $0x8] sm:$0xff]  ;;  %v2085_v9 = vld [vmem:[%s2038_s13 + $0x10] sm:$0xff]  ;;  %s2087_s27 = sld [smem:[#allocation7 + $0x5]] }
  0x79   : > { %1586 = vmatmul.mubr.msk.f32.vlgmr.msra.gmra.mrb[0].mxu0 %vm616_vm0, %v613_v2  ;;  %1593 = vmatprep.subr.mxu0 %v1512_v3  ;;  %v2079_v7 = vld [vmem:[%s2038_s13] sm:$0xff]  ;;  %v2090_v10 = vld [vmem:[%s2038_s13 + $0x18] sm:$0xff]  ;;  %v2096_v12 = vld [vmem:[%s2038_s13 + $0x28] sm:$0xff]  ;;  %s2098_s9 = sld [smem:[#allocation8]]  ;;  %s2102_s10 = sld [smem:[#allocation7 + $0x81]] }
  0x7a   : > { %1594 = vmatpush3.msra.mxu0 %v1512_v3  ;;  %1595 = vmatprep.mubr.msk.f32.mxu0 %vm616_vm0, %v612_v1  ;;  %v2093_v11 = vld [vmem:[%s2038_s13 + $0x20] sm:$0xff]  ;;  %s2100_s24 = sld [smem:[#allocation7 + $0x80]]  ;;  %v2107_v18 = vld [vmem:[%s2038_s13 + $0x30] sm:$0xff]  ;;  %v2110_v19 = vld [vmem:[%s2038_s13 + $0x38] sm:$0xff]  ;;  %s2112_s12 = sld [smem:[#allocation7 + $0x82]] }
  0x7b   : > { %1603 = vmatprep.subr.mxu0 %v1521_v4  ;;  %1588 = vmatprep.subr.mxu1 %v2069_v6  ;;  %s2114_s16 = sld [smem:[#allocation7 + $0x83]]  ;;  %v2121_v24 = vld [vmem:[%s2038_s13 + $0x40] sm:$0xff]  ;;  %v2124_v25 = vld [vmem:[%s2038_s13 + $0x48] sm:$0xff]  ;;  %v2129_v28 = vld [vmem:[%s2038_s13 + $0x50] sm:$0xff]  ;;  %s2134_s17 = sld [smem:[#allocation7 + $0x84]] }
  0x7c   : > { %1589 = vmatpush3.msra.mxu1 %v2069_v6  ;;  %v342_v13 = vstv %s339_s30  ;;  %v349_v16 = vstv %s1424_s18  ;;  %v2132_v29 = vld [vmem:[%s2038_s13 + $0x58] sm:$0xff]  ;;  %s2136_s8 = sld [smem:[#allocation7 + $0x85]]  ;;  %s2146_s13 = sld [smem:[#allocation8 + $0x1]] }
  0x7d   : > { %1596 = vmatmul.mubr.msk.f32.vlgmr.msra.gmra.mrb[2].mxu0 %vm616_vm0, %v613_v2  ;;  %1598 = vmatprep.subr.mxu1 %v2069_v6  ;;  %v343_v14 = vmul.f32 %v342_v13, %v2079_v7  ;;  %v344_v15 = vmul.f32 %v342_v13, %v2082_v8  ;;  %v358_v17 = vstv %s1427_s14  ;;  %v350_v20 = vmul.f32 %v2085_v9, %v349_v16  ;;  %s2148_s11 = sld [smem:[#allocation7 + $0x100]]  ;;  %p334_p5 = scmp.lt.s32.totalorder %s1891_s25, 1 }
  0x7e   : > { %1604 = vmatpush3.msra.mxu0 %v1521_v4  ;;  %1605 = vmatprep.mubr.msk.f32.mxu0 %vm616_vm0, %v612_v1  ;;  %v351_v21 = vmul.f32 %v2090_v10, %v349_v16  ;;  %v359_v22 = vmul.f32 %v2093_v11, %v358_v17  ;;  %v360_v23 = vmul.f32 %v2096_v12, %v358_v17  ;;  %v367_v26 = vstv %s2074_s19  ;;  %s2161_s7 = sld [smem:[#allocation7 + $0x101]]  ;;  %s2163_s15 = sld [smem:[#allocation7 + $0x102]] }
  0x7f   : > { %1613 = vmatprep.subr.mxu0 %v1530_v5  ;;  %v376_v27 = vstv %s2076_s20  ;;  %v352_v30 = vadd.f32 %v350_v20, %v343_v14  ;;  %v368_v32 = vmul.f32 %v2107_v18, %v367_v26  ;;  %v369_v33 = vmul.f32 %v2110_v19, %v367_v26  ;;  %s2331_s25 = smov (!%p334_p5, %s1891_s25), 1  ;;  %s2178_s21 = sld [smem:[#allocation7 + $0x103]] }
  0x80   : > { %v353_v31 = vadd.f32 %v351_v21, %v344_v15  ;;  %v377_v34 = vmul.f32 %v2121_v24, %v376_v27  ;;  %v378_v35 = vmul.f32 %v2124_v25, %v376_v27  ;;  %v385_v36 = vstv %s2087_s27  ;;  %s2180_s28 = sld [smem:[#allocation7 + $0x104]]  ;;  %s1542_s30 = sshll.u32 %s2331_s25, 6 }
  0x81   : > { %1606 = vmatmul.mubr.msk.f32.vlgmr.msra.gmra.mrb[4].mxu0 %vm616_vm0, %v613_v2  ;;  %v391_v37 = vstv %s2098_s9  ;;  %v361_v38 = vadd.f32 %v359_v22, %v352_v30  ;;  %v386_v40 = vmul.f32 %v2129_v28, %v385_v36  ;;  %v387_v41 = vmul.f32 %v2132_v29, %v385_v36  ;;  %s2189_s18 = sld [smem:[#allocation7 + $0x105]]  ;;  %s2191_s14 = sld [smem:[#allocation8 + $0x2]] }
  0x82   : > { %1614 = vmatpush3.msra.mxu0 %v1530_v5  ;;  %1615 = vmatprep.mubr.msk.f32.mxu0 %vm616_vm0, %v612_v1  ;;  %v362_v39 = vadd.f32 %v360_v23, %v353_v31  ;;  %v414_v42 = vstv %s2100_s24  ;;  %v420_v43 = vstv %s2102_s10  ;;  %v428_v44 = vstv %s2112_s12  ;;  %s2195_s25 = sld [smem:[#allocation7 + $0x180]]  ;;  %s2197_s19 = sld [smem:[#allocation7 + $0x181]] }
  0x83   : > { %v436_v45 = vstv %s2114_s16  ;;  %v370_v46 = vadd.f32 %v368_v32, %v361_v38  ;;  %v415_v48 = vmul.f32 %v414_v42, %v2079_v7  ;;  %v416_v49 = vmul.f32 %v414_v42, %v2082_v8  ;;  %s2202_s9 = scalar_lea.vmem %s2309_s6, %s1542_s30  ;;  %s2212_s24 = sld [smem:[#allocation7 + $0x182]] }
  0x84   : > { %v371_v47 = vadd.f32 %v369_v33, %v362_v39  ;;  %v421_v50 = vmul.f32 %v2085_v9, %v420_v43  ;;  %v422_v51 = vmul.f32 %v2090_v10, %v420_v43  ;;  %v429_v52 = vmul.f32 %v2093_v11, %v428_v44  ;;  %s2214_s10 = sld [smem:[#allocation7 + $0x183]]  ;;  %s2220_s12 = sld [smem:[#allocation7 + $0x184]] }
  0x85   : > { %1616 = vmatmul.mubr.msk.f32.vlgmr.msra.gmra.mrb[6].mxu0 %vm616_vm0, %v613_v2  ;;  %v430_v53 = vmul.f32 %v2096_v12, %v428_v44  ;;  %v379_v54 = vadd.f32 %v377_v34, %v370_v46  ;;  %v437_v56 = vmul.f32 %v2107_v18, %v436_v45  ;;  %v438_v57 = vmul.f32 %v2110_v19, %v436_v45  ;;  %s2222_s16 = sld [smem:[#allocation7 + $0x185]] }
  0x86   : > { %v380_v55 = vadd.f32 %v378_v35, %v371_v47  ;;  %v423_v58 = vadd.f32 %v421_v50, %v415_v48  ;;  %v424_v59 = vadd.f32 %v422_v51, %v416_v49  ;;  %v444_v60 = vstv %s2134_s17  ;;  %s2240_s17 = sld [smem:[#allocation8 + $0x3]] }
  0x87   : > { %v452_v61 = vstv %s2136_s8  ;;  %v388_v62 = vadd.f32 %v386_v40, %v379_v54  ;;  %v445_v0 = vmul.f32 %v2121_v24, %v444_v60  ;;  %v446_v1 = vmul.f32 %v2124_v25, %v444_v60 }
  0x88   : > { %v389_v63 = vadd.f32 %v387_v41, %v380_v55  ;;  %v431_v2 = vadd.f32 %v429_v52, %v423_v58  ;;  %v432_v3 = vadd.f32 %v430_v53, %v424_v59  ;;  %v453_v4 = vmul.f32 %v2129_v28, %v452_v61 }
  0x89   : > { %v454_v5 = vmul.f32 %v2132_v29, %v452_v61  ;;  %v392_v13 = vadd.f32 %v391_v37, %v388_v62  ;;  %v458_v15 = vstv %s2146_s13  ;;  %v481_v16 = vstv %s2148_s11 }
  0x8a   : > { %v393_v14 = vadd.f32 %v391_v37, %v389_v63  ;;  %v439_v17 = vadd.f32 %v437_v56, %v431_v2  ;;  %v440_v20 = vadd.f32 %v438_v57, %v432_v3  ;;  %v482_v21 = vmul.f32 %v481_v16, %v2079_v7 }
  0x8b   : > { %v483_v22 = vmul.f32 %v481_v16, %v2082_v8  ;;  %vm394_vm2 = vcmp.ge.f32.partialorder %v392_v13, 0.0  ;;  %v396_v23 = vmul.f32 0.2, %v392_v13  ;;  %v487_v31 = vstv %s2161_s7 }
  0x8c   : > { %vm395_vm3 = vcmp.ge.f32.partialorder %v393_v14, 0.0  ;;  %v397_v26 = vmul.f32 0.2, %v393_v14  ;;  %v447_v27 = vadd.f32 %v445_v0, %v439_v17  ;;  %v448_v30 = vadd.f32 %v446_v1, %v440_v20 }
  0x8d   : > { %v495_v32 = vstv %s2163_s15  ;;  %v398_v33 = vsel %vm394_vm2, %v392_v13, %v396_v23  ;;  %v488_v35 = vmul.f32 %v2085_v9, %v487_v31  ;;  %v489_v36 = vmul.f32 %v2090_v10, %v487_v31 }
  0x8e   : > { %v399_v34 = vsel %vm395_vm3, %v393_v14, %v397_v26  ;;  %v1543_v37 = vpack.c.bf16 %v398_v33, %v398_v33  ;;  %v455_v39 = vadd.f32 %v453_v4, %v447_v27  ;;  %v456_v40 = vadd.f32 %v454_v5, %v448_v30 }
  0x8f   : > { %v1544_v38 = vpack.c.bf16 %v399_v34, %v399_v34  ;;  %v490_v41 = vadd.f32 %v488_v35, %v482_v21  ;;  %v491_v42 = vadd.f32 %v489_v36, %v483_v22  ;;  %v496_v43 = vmul.f32 %v2093_v11, %v495_v32 }
  0x90   : > { %v497_v44 = vmul.f32 %v2096_v12, %v495_v32  ;;  %409 = vst.msk [vmem:[%s2202_s9] sm:$0xf] %vm408_vm1, %v1543_v37  ;;  %v459_v45 = vadd.f32 %v458_v15, %v455_v39  ;;  %v460_v46 = vadd.f32 %v458_v15, %v456_v40  ;;  %v503_v47 = vstv %s2178_s21 }
  0x91   : > { %410 = vst.msk [vmem:[%s2202_s9 + $0x4] sm:$0xf] %vm408_vm1, %v1544_v38  ;;  %v511_v48 = vstv %s2180_s28  ;;  %v498_v49 = vadd.f32 %v496_v43, %v490_v41  ;;  %v504_v51 = vmul.f32 %v2107_v18, %v503_v47  ;;  %v505_v52 = vmul.f32 %v2110_v19, %v503_v47 }
  0x92   : > { %v499_v50 = vadd.f32 %v497_v44, %v491_v42  ;;  %vm461_vm4 = vcmp.ge.f32.partialorder %v459_v45, 0.0  ;;  %vm462_vm5 = vcmp.ge.f32.partialorder %v460_v46, 0.0  ;;  %v463_v53 = vmul.f32 0.2, %v459_v45 }
  0x93   : > { %v464_v54 = vmul.f32 0.2, %v460_v46  ;;  %v506_v55 = vadd.f32 %v504_v51, %v498_v49  ;;  %v512_v57 = vmul.f32 %v2121_v24, %v511_v48  ;;  %v513_v58 = vmul.f32 %v2124_v25, %v511_v48 }
  0x94   : > { %v507_v56 = vadd.f32 %v505_v52, %v499_v50  ;;  %v465_v59 = vsel %vm461_vm4, %v459_v45, %v463_v53  ;;  %v519_v61 = vstv %s2189_s18  ;;  %v525_v62 = vstv %s2191_s14 }
  0x95   : > { %v466_v60 = vsel %vm462_vm5, %v460_v46, %v464_v54  ;;  %v1545_v63 = vpack.c.bf16 %v465_v59, %v465_v59  ;;  %v514_v1 = vadd.f32 %v512_v57, %v506_v55  ;;  %v520_v3 = vmul.f32 %v2129_v28, %v519_v61 }
  0x96   : > { %v1546_v0 = vpack.c.bf16 %v466_v60, %v466_v60  ;;  %v515_v2 = vadd.f32 %v513_v58, %v507_v56  ;;  %v521_v4 = vmul.f32 %v2132_v29, %v519_v61  ;;  %v548_v5 = vstv %s2195_s25 }
  0x97   : > { %v554_v13 = vstv %s2197_s19  ;;  %1460 = vst.msk [vmem:[%s2202_s9 + $0x8] sm:$0xf] %vm408_vm1, %v1545_v63  ;;  %v549_v14 = vmul.f32 %v548_v5, %v2079_v7  ;;  %v550_v15 = vmul.f32 %v548_v5, %v2082_v8  ;;  %v522_v20 = vadd.f32 %v520_v3, %v514_v1 }
  0x98   : > { %1461 = vst.msk [vmem:[%s2202_s9 + $0xc] sm:$0xf] %vm408_vm1, %v1546_v0  ;;  %v555_v16 = vmul.f32 %v2085_v9, %v554_v13  ;;  %v556_v17 = vmul.f32 %v2090_v10, %v554_v13  ;;  %v523_v21 = vadd.f32 %v521_v4, %v515_v2  ;;  %v562_v22 = vstv %s2212_s24 }
  0x99   : > { %v570_v23 = vstv %s2214_s10  ;;  %v563_v30 = vmul.f32 %v2093_v11, %v562_v22  ;;  %v564_v7 = vmul.f32 %v2096_v12, %v562_v22  ;;  %v526_v31 = vadd.f32 %v525_v62, %v522_v20 }
  0x9a   : > { %v557_v26 = vadd.f32 %v555_v16, %v549_v14  ;;  %v558_v27 = vadd.f32 %v556_v17, %v550_v15  ;;  %v527_v8 = vadd.f32 %v525_v62, %v523_v21  ;;  %v571_v9 = vmul.f32 %v2107_v18, %v570_v23 }
  0x9b   : > { %v572_v10 = vmul.f32 %v2110_v19, %v570_v23  ;;  %v578_v34 = vstv %s2220_s12  ;;  %v586_v35 = vstv %s2222_s16  ;;  %vm528_vm6 = vcmp.ge.f32.partialorder %v526_v31, 0.0 }
  0x9c   : > { %v565_v32 = vadd.f32 %v563_v30, %v557_v26  ;;  %v566_v33 = vadd.f32 %v564_v7, %v558_v27  ;;  %vm529_vm7 = vcmp.ge.f32.partialorder %v527_v8, 0.0  ;;  %v530_v36 = vmul.f32 0.2, %v526_v31 }
  0x9d   : > { %v531_v37 = vmul.f32 0.2, %v527_v8  ;;  %v579_v12 = vmul.f32 %v2121_v24, %v578_v34  ;;  %v580_v39 = vmul.f32 %v2124_v25, %v578_v34  ;;  %v587_v19 = vmul.f32 %v2129_v28, %v586_v35 }
  0x9e   : > { %v573_v11 = vadd.f32 %v571_v9, %v565_v32  ;;  %v574_v38 = vadd.f32 %v572_v10, %v566_v33  ;;  %v532_v18 = vsel %vm528_vm6, %v526_v31, %v530_v36  ;;  %v588_v41 = vmul.f32 %v2132_v29, %v586_v35 }
  0x9f   : > { %v533_v40 = vsel %vm529_vm7, %v527_v8, %v531_v37  ;;  %v1547_v42 = vpack.c.bf16 %v532_v18, %v532_v18  ;;  %v592_v46 = vstv %s2240_s17 }
  0xa0   : > { %v1548_v43 = vpack.c.bf16 %v533_v40, %v533_v40  ;;  %v581_v44 = vadd.f32 %v579_v12, %v573_v11  ;;  %v582_v45 = vadd.f32 %v580_v39, %v574_v38 }
  0xa1   : > { %1481 = vst.msk [vmem:[%s2202_s9 + $0x10] sm:$0xf] %vm408_vm1, %v1547_v42 }
  0xa2   : > { %1482 = vst.msk [vmem:[%s2202_s9 + $0x14] sm:$0xf] %vm408_vm1, %v1548_v43  ;;  %v589_v24 = vadd.f32 %v587_v19, %v581_v44  ;;  %v590_v47 = vadd.f32 %v588_v41, %v582_v45 }
  0xa4   : > { %v593_v25 = vadd.f32 %v592_v46, %v589_v24  ;;  %v594_v48 = vadd.f32 %v592_v46, %v590_v47 }
  0xa6   : > { %vm595_vm8 = vcmp.ge.f32.partialorder %v593_v25, 0.0  ;;  %vm596_vm9 = vcmp.ge.f32.partialorder %v594_v48, 0.0  ;;  %v597_v28 = vmul.f32 0.2, %v593_v25  ;;  %v598_v49 = vmul.f32 0.2, %v594_v48 }
  0xa8   : > { %v599_v29 = vsel %vm595_vm8, %v593_v25, %v597_v28  ;;  %v600_v50 = vsel %vm596_vm9, %v594_v48, %v598_v49 }
  0xa9   : > { %v1549_v51 = vpack.c.bf16 %v599_v29, %v599_v29  ;;  %v1550_v52 = vpack.c.bf16 %v600_v50, %v600_v50 }
  0xab   : > { %1502 = vst.msk [vmem:[%s2202_s9 + $0x18] sm:$0xf] %vm408_vm1, %v1549_v51  ;;  %1503 = vst.msk [vmem:[%s2202_s9 + $0x1c] sm:$0xf] %vm408_vm1, %v1550_v52 }
 0x14c   : > { %v1587_v53 = vpop.f32.mrb[0].mxu0 }
 0x14d   : > { %v689_v54 = vpop.f32.mrb[1].mxu0 }
 0x14e   : > { %1590 = vmatprep.mubr.msk.f32.mxu1 %vm616_vm0, %v689_v54 }
 0x14f   : > { %1591 = vmatmul.mubr.msk.f32.vlgmr.msra.gmra.mrb[0].mxu1 %vm616_vm0, %v1587_v53 }
 0x150   : > { %v1597_v55 = vpop.f32.mrb[2].mxu0  ;;  %1599 = vmatpush3.msra.mxu1 %v2069_v6 }
 0x151   : > { %v858_v56 = vpop.f32.mrb[3].mxu0  ;;  %1608 = vmatprep.subr.mxu1 %v2069_v6 }
 0x152   : > { %1600 = vmatprep.mubr.msk.f32.mxu1 %vm616_vm0, %v858_v56 }
 0x153   : > { %1601 = vmatmul.mubr.msk.f32.vlgmr.msra.gmra.mrb[2].mxu1 %vm616_vm0, %v1597_v55 }
 0x154   : > { %v1607_v57 = vpop.f32.mrb[4].mxu0  ;;  %1609 = vmatpush3.msra.mxu1 %v2069_v6 }
 0x155   : > { %v1027_v58 = vpop.f32.mrb[5].mxu0  ;;  %1618 = vmatprep.subr.mxu1 %v2069_v6 }
 0x156   : > { %1610 = vmatprep.mubr.msk.f32.mxu1 %vm616_vm0, %v1027_v58 }
 0x157   : > { %1611 = vmatmul.mubr.msk.f32.vlgmr.msra.gmra.mrb[4].mxu1 %vm616_vm0, %v1607_v57 }
 0x158   : > { %v1617_v59 = vpop.f32.mrb[6].mxu0  ;;  %1619 = vmatpush3.msra.mxu1 %v2069_v6 }
 0x159   : > { %v1196_v60 = vpop.f32.mrb[7].mxu0 }
 0x15a   : > { %1620 = vmatprep.mubr.msk.f32.mxu1 %vm616_vm0, %v1196_v60 }
 0x15b   : > { %1621 = vmatmul.mubr.msk.f32.vlgmr.msra.gmra.mrb[6].mxu1 %vm616_vm0, %v1617_v59 }
 0x222   : > { %v1592_v61 = vpop.f32.mrb[0].mxu1 }
 0x223   : > { %v1552_v62 = vpack.c.bf16 %v1592_v61, %v1592_v61  ;;  %v770_v63 = vpop.f32.mrb[1].mxu1 }
 0x224   : > { %v1551_v0 = vpack.c.bf16 %v770_v63, %v770_v63 }
 0x225   : > { %1511 = vst.msk [vmem:[%s2202_s9 + $0x24] sm:$0xf] %vm408_vm1, %v1552_v62 }
 0x226   : > { %1510 = vst.msk [vmem:[%s2202_s9 + $0x20] sm:$0xf] %vm408_vm1, %v1551_v0  ;;  %v1602_v1 = vpop.f32.mrb[2].mxu1 }
 0x227   : > { %v1554_v2 = vpack.c.bf16 %v1602_v1, %v1602_v1  ;;  %v939_v6 = vpop.f32.mrb[3].mxu1 }
 0x228   : > { %v1553_v3 = vpack.c.bf16 %v939_v6, %v939_v6 }
 0x229   : > { %1520 = vst.msk [vmem:[%s2202_s9 + $0x2c] sm:$0xf] %vm408_vm1, %v1554_v2 }
 0x22a   : > { %1519 = vst.msk [vmem:[%s2202_s9 + $0x28] sm:$0xf] %vm408_vm1, %v1553_v3  ;;  %v1612_v4 = vpop.f32.mrb[4].mxu1 }
 0x22b   : > { %v1556_v5 = vpack.c.bf16 %v1612_v4, %v1612_v4  ;;  %v1108_v13 = vpop.f32.mrb[5].mxu1 }
 0x22c   : > { %v1555_v14 = vpack.c.bf16 %v1108_v13, %v1108_v13 }
 0x22d   : > { %1529 = vst.msk [vmem:[%s2202_s9 + $0x34] sm:$0xf] %vm408_vm1, %v1556_v5 }
 0x22e   : > { %1528 = vst.msk [vmem:[%s2202_s9 + $0x30] sm:$0xf] %vm408_vm1, %v1555_v14  ;;  %v1622_v15 = vpop.f32.mrb[6].mxu1 }
 0x22f   : > { %v1558_v16 = vpack.c.bf16 %v1622_v15, %v1622_v15  ;;  %v1277_v17 = vpop.f32.mrb[7].mxu1 }
 0x230   : > { %v1557_v20 = vpack.c.bf16 %v1277_v17, %v1277_v17 }
 0x231   : > { %1538 = vst.msk [vmem:[%s2202_s9 + $0x3c] sm:$0xf] %vm408_vm1, %v1558_v16 }
 0x232   : > { %1537 = vst.msk [vmem:[%s2202_s9 + $0x38] sm:$0xf] %vm408_vm1, %v1557_v20 }
 0x233 PF: > { %p21_p12 = scmp.ge.s32.totalorder %s1894_s26, 4   ;;  %s2326_s21 = smov %s1821_s22 }
 0x234   : > { %s2327_s22 = smov %s1825_s23  ;;  %s2328_s23 = smov %s1904_s29 }
 0x235   : > { %s2329_s24 = smov %s1894_s26  ;;  %23 = sbr.rel (!%p21_p12) target bundleno = 7 (0x7), region = 121 }
 0x23c   :  { %1318 = vsyncpa [#allocation3], 1 }
 0x23d   :  { %1320 = vsyncpa [#allocation3 + $0x1], 1 }
 0x23e   :  { %1321 = vsyncpa [#allocation6], 1 }
 0x23f   :  { %1323 = vsyncpa [#allocation6 + $0x1], 1 }
 0x240   :  { %1324 = vsyncpa [#allocation4], 1 }
 0x241   :  { %1326 = vsyncpa [#allocation4 + $0x1], 1 }
 0x242   :  { %1327 = vsyncpa [#allocation9], 1 }

// kernel: up_forward.3
= control target key start
LH: loop header
LB: loop body
LE: loop exit
PB: predicated region body
PF: predicated region fallthrough
CT: control target
= control target key end

     0   :  { %s1822_s21 = smov 0   ;;  %s2198_s0 = inlined_call_operand.vmem [shape: bf16[2,8,256], index: 0, kind: input, shape index: {}]   ;;  %s2199_s1 = inlined_call_operand.vmem [shape: s32[4,256], index: 1, kind: input, shape index: {}]   ;;  %s2200_s2 = inlined_call_operand.vmem [shape: bf16[9,8,8], index: 2, kind: input, shape index: {}]   ;;  %s2201_s3 = inlined_call_operand.vmem [shape: f32[8,1], index: 3, kind: input, shape index: {}]   ;;  %s2202_s4 = inlined_call_operand.vmem [shape: bf16[9,8,8], index: 4, kind: input, shape index: {}]   ;;  %s2203_s5 = inlined_call_operand.vmem [shape: f32[8,1], index: 5, kind: input, shape index: {}]   ;;  %s2204_s6 = inlined_call_operand.vmem [shape: f32[2,8,256], index: 6, kind: output, shape index: {}]  }
   0x1 LB: > { %s1611_s22 = sadd.s32 4294967295, %s1780_s21   ;;  %p1615_p0 = scmp.ge.s32.totalorder %s1780_s21, 1  ;;  %s1780_s21 = sphi %s1822_s21, %s16_s21  }
   0x2   : > { %p212_p1 = scmp.lt.s32.totalorder %s1780_s21, 3 }
   0x4   : > { %p213_p2 = pnand %p1615_p0, %p212_p1 }
   0x5   : > { %p242_p3 = scmp.lt.s32.totalorder (!%p213_p2), %s1611_s22, 1  ;;  %v1782_v0 = vmov (!%p213_p2), 0   ;;  %s1783_s27 = smov (!%p213_p2), 127   ;;  %v281_v6 = vlaneseq (!%p213_p2)  ;;  %v253_v7 = vld [vmem:[%s2199_s1] sm:$0xff] (!%p213_p2)  ;;  %vm264_vm1 = vcmask (!%p213_p2), 1039360   ;;  %vm275_vm2 = vcmask (!%p213_p2), 7168  }
   0x6   : > { %216 = sbr.rel (%p213_p2) target bundleno = 1021 (0x3fd), region = 44  ;;  %479 = vmatprep.mubr.bf16.mxu0 (!%p213_p2), %v1782_v0  ;;  %529 = vmatprep.mubr.bf16.mxu1 (!%p213_p2), %v1782_v0  ;;  %s1784_s28 = smov (!%p213_p2), 112   ;;  %vm254_vm0 = vcmp.ne.s32.totalorder (!%p213_p2), %v253_v7, 0  ;;  %vm327_vm7 = vcmask (!%p213_p2), 916480   ;;  %vm338_vm8 = vcmask (!%p213_p2), 130048   ;;  %vm440_vm13 = vcmask (!%p213_p2), 1043456  }
   0x7   : > { %1731 = vset.pattern.permute.xlu0 (!%p213_p2), %v1782_v0  ;;  %s1785_s29 = smov (!%p213_p2), 1   ;;  %s1786_s30 = smov (!%p213_p2), 16   ;;  %v282_v8 = vshrl.u32 (!%p213_p2), %v281_v6, 7  ;;  %v280_v11 = vsel (!%p213_p2), %vm254_vm0, 1, %v1782_v0  ;;  %vm436_vm14 = vcmask (!%p213_p2), 64512  }
   0x9   : > { %v283_v9 = vsub.s32 (!%p213_p2), 0, %v282_v8  ;;  %v287_v10 = vsub.s32 (!%p213_p2), 4, %v282_v8  ;;  %v303_v12 = vsub.s32 (!%p213_p2), 1, %v282_v8  ;;  %v307_v13 = vsub.s32 (!%p213_p2), 5, %v282_v8 }
   0xa   : > { %v345_v14 = vsub.s32 (!%p213_p2), 2, %v282_v8  ;;  %v349_v15 = vsub.s32 (!%p213_p2), 6, %v282_v8  ;;  %v411_v16 = vsub.s32 (!%p213_p2), 7, %v282_v8  ;;  %v407_v22 = vsub.s32 (!%p213_p2), 3, %v282_v8 }
   0xb   : > { %v284_v17 = vrot.slane (!%p213_p2), %v280_v11, %v283_v9  ;;  %v288_v18 = vrot.slane (!%p213_p2), %v280_v11, %v287_v10  ;;  %v304_v19 = vrot.slane (!%p213_p2), %v280_v11, %v303_v12  ;;  %v308_v20 = vrot.slane (!%p213_p2), %v280_v11, %v307_v13 }
   0xc   : > { %v350_v21 = vrot.slane (!%p213_p2), %v280_v11, %v349_v15  ;;  %v412_v23 = vrot.slane (!%p213_p2), %v280_v11, %v411_v16  ;;  %v346_v24 = vrot.slane (!%p213_p2), %v280_v11, %v345_v14  ;;  %v408_v34 = vrot.slane (!%p213_p2), %v280_v11, %v407_v22  ;;  %v1620_v11 = vld [vmem:[%s2200_s2 + $0x4] sm:$0xf] (!%p213_p2) }
   0xd   : > { %s2214_s22 = smov (!%p242_p3, %s1611_s22), 1  ;;  %v1851_v25 = vrot.slane %v284_v17, %v283_v9  ;;  %v296_v26 = vrot.slane %v288_v18, %v283_v9  ;;  %v1853_v27 = vrot.slane %v304_v19, %v303_v12  ;;  %v316_v28 = vrot.slane %v308_v20, %v303_v12  ;;  %v933_v12 = vld [vmem:[%s2201_s3] sm:$0xff] }
   0xe   : > { %s1676_s23 = sshll.u32 %s2214_s22, 3  ;;  %v358_v31 = vrot.slane %v350_v21, %v345_v14  ;;  %v420_v32 = vrot.slane %v412_v23, %v407_v22  ;;  %v1855_v33 = vrot.slane %v346_v24, %v345_v14  ;;  %v1876_v45 = vrot.slane %v408_v34, %v407_v22  ;;  %s1677_s9 = sshll.u32 %s2214_s22, 4 }
   0xf   : > { %s246_s26 = scalar_lea.vmem %s2198_s0, %s1676_s23  ;;  %vm297_vm3 = vcmp.eq.s32.totalorder %v1851_v25, 1  ;;  %vm1858_vm4 = vcmp.eq.s32.totalorder %v296_v26, 1  ;;  %vm317_vm5 = vcmp.eq.s32.totalorder %v1853_v27, 1  ;;  %vm1863_vm6 = vcmp.eq.s32.totalorder %v316_v28, 1 }
  0x10   : > { %v1839_v1 = vld [vmem:[%s246_s26] sm:$0xff]  ;;  %vm1867_vm9 = vcmp.eq.s32.totalorder %v358_v31, 1  ;;  %vm1871_vm10 = vcmp.eq.s32.totalorder %v420_v32, 1  ;;  %vm359_vm11 = vcmp.eq.s32.totalorder %v1855_v33, 1  ;;  %vm421_vm12 = vcmp.eq.s32.totalorder %v1876_v45, 1 }
  0x11   : > { %v256_v2 = vunpack.c.l.bf16 %v1839_v1  ;;  %v257_v3 = vunpack.c.h.bf16 %v1839_v1  ;;  %v1668_v45 = vld [vmem:[%s2202_s4 + $0x1c] sm:$0xf] }
  0x13   : > { %v1691_v4 = vpack.i.bf16 %v257_v3, %v256_v2  ;;  %v1696_v5 = vpack.i.bf16 %v256_v2, %v257_v3 }
  0x15   : > { %1692 = vrot.lane.b32.xlu0 %v1691_v4, %s1783_s27  ;;  %1702 = vrot.lane.b32.xlu1 %v1691_v4, %s1784_s28 }
  0x19   : > { %1697 = vrot.lane.b32.xlu0 %v1696_v5, %s1785_s29  ;;  %1707 = vrot.lane.b32.xlu1 %v1696_v5, %s1786_s30 }
  0x87   : > { %v1693_v29 = vpop.permute.xlu0 %1692  ;;  %v1703_v30 = vpop.permute.xlu1 %1702 }
  0x88   : > { %v1695_v36 = vunpack.i.h.bf16 %v1693_v29  ;;  %v1694_v37 = vunpack.i.l.bf16 %v1693_v29  ;;  %v1705_v38 = vunpack.i.h.bf16 %v1703_v30  ;;  %v1704_v39 = vunpack.i.l.bf16 %v1703_v30 }
  0x8a   : > { %v265_v50 = vsel %vm264_vm1, %v1694_v37, %v1695_v36  ;;  %v269_v51 = vsel %vm264_vm1, %v1695_v36, %v1694_v37  ;;  %v371_v52 = vsel %vm327_vm7, %v1705_v38, %v1704_v39  ;;  %v367_v53 = vsel %vm327_vm7, %v1704_v39, %v1705_v38 }
  0x8b   : > { %v1698_v41 = vpop.permute.xlu0 %1697  ;;  %v1708_v42 = vpop.permute.xlu1 %1707 }
  0x8c   : > { %v1700_v46 = vunpack.i.h.bf16 %v1698_v41  ;;  %v1699_v47 = vunpack.i.l.bf16 %v1698_v41  ;;  %v1710_v48 = vunpack.i.h.bf16 %v1708_v42  ;;  %v1709_v49 = vunpack.i.l.bf16 %v1708_v42 }
  0x8e   : > { %v276_v54 = vsel %vm275_vm2, %v1700_v46, %v1699_v47  ;;  %v279_v55 = vsel %vm275_vm2, %v1699_v47, %v1700_v46  ;;  %v377_v56 = vsel %vm338_vm8, %v1710_v48, %v1709_v49  ;;  %v380_v57 = vsel %vm338_vm8, %v1709_v49, %v1710_v48 }
  0x8f   : > { %v1888_v58 = vsel %vm297_vm3, %v265_v50, %v279_v55  ;;  %v1892_v59 = vsel %vm1858_vm4, %v269_v51, %v276_v54  ;;  %v1900_v62 = vsel %vm317_vm5, %v279_v55, %v265_v50  ;;  %v1905_v63 = vsel %vm1863_vm6, %v276_v54, %v269_v51  ;;  %v429_v50 = vld [vmem:[%s2200_s2] sm:$0xf] }
  0x90   : > { %v1716_v60 = vpack.i.bf16 %v1888_v58, %v1892_v59  ;;  %v1711_v61 = vpack.i.bf16 %v1892_v59, %v1888_v58  ;;  %v382_v2 = vsel %vm1867_vm9, %v371_v52, %v377_v56  ;;  %v1911_v3 = vsel %vm1871_vm10, %v377_v56, %v371_v52 }
  0x91   : > { %v381_v4 = vsel %vm359_vm11, %v367_v53, %v380_v57  ;;  %v435_v5 = vpack.c.bf16 %v382_v2, %v382_v2  ;;  %v1726_v7 = vpack.i.bf16 %v1900_v62, %v1905_v63  ;;  %v1721_v8 = vpack.i.bf16 %v1905_v63, %v1900_v62  ;;  %v1628_v2 = vld [vmem:[%s2200_s2 + $0xc] sm:$0xf] }
  0x92   : > { %1717 = vrot.lane.b32.xlu1 %v1716_v60, %s1786_s30  ;;  %1712 = vrot.lane.b32.xlu0 %v1711_v61, %s1784_s28  ;;  %v434_v6 = vpack.c.bf16 %v381_v4, %v381_v4  ;;  %v1925_v10 = vsel %vm421_vm12, %v380_v57, %v367_v53  ;;  %v597_v37 = vpack.c.bf16 %v1892_v59, %v1892_v59 }
  0x93   : > { %1621 = vmatprep.subr.msk.bf16.mxu0 %vm440_vm13, %v435_v5  ;;  %v596_v49 = vpack.c.bf16 %v1888_v58, %v1888_v58  ;;  %v1633_v53 = vcombine.high %v1839_v1, %v1839_v1  ;;  %v1632_v54 = vcombine.low %v1839_v1, %v1839_v1  ;;  %v712_v58 = vpack.c.bf16 %v1905_v63, %v1905_v63  ;;  %v1625_v1 = vld [vmem:[%s2200_s2 + $0x8] sm:$0xf] }
  0x94   : > { %v442_v9 = vsel %vm440_vm13, %v434_v6, 0  ;;  %v711_v61 = vpack.c.bf16 %v1900_v62, %v1900_v62  ;;  %v824_v5 = vpack.c.bf16 %v1911_v3, %v1911_v3  ;;  %v1631_v62 = vld [vmem:[%s2200_s2 + $0x10] sm:$0xf] }
  0x95   : > { %448 = vmatpush1.bf16.msra.mxu0 %v442_v9  ;;  %v602_v57 = vsel %vm440_vm13, %v596_v49, 0  ;;  %v661_v59 = vsel %vm440_vm13, %v1632_v54, 0  ;;  %v823_v9 = vpack.c.bf16 %v1925_v10, %v1925_v10  ;;  %v1639_v10 = vld [vmem:[%s2200_s2 + $0x18] sm:$0xf] }
  0x96   : > { %1727 = vrot.lane.b32.xlu1 %v1726_v7, %s1786_s30  ;;  %1722 = vrot.lane.b32.xlu0 %v1721_v8, %s1784_s28  ;;  %v717_v6 = vsel %vm440_vm13, %v711_v61, 0 }
  0x98   : > { %1622 = vmatmul.mubr.msk.bf16.vlgmr.msra.gmra.mrb[0].mxu0 %vm436_vm14, %v1620_v11 }
  0x99   : > { %583 = vmatprep.mubr.bf16.mxu0 %v1782_v0 }
  0x9a   : > { %936 = vperm.xlu0 %1731, %v933_v12   ;;  %v1636_v12 = vld [vmem:[%s2200_s2 + $0x14] sm:$0xf] }
 0x104   : > { %v1718_v13 = vpop.permute.xlu1 %1717  ;;  %v1713_v14 = vpop.permute.xlu0 %1712 }
 0x105   : > { %v1720_v15 = vunpack.i.h.bf16 %v1718_v13  ;;  %v1719_v16 = vunpack.i.l.bf16 %v1718_v13  ;;  %v1715_v17 = vunpack.i.h.bf16 %v1713_v14  ;;  %v1714_v18 = vunpack.i.l.bf16 %v1713_v14 }
 0x106   : > { %v829_v14 = vsel %vm440_vm13, %v823_v9, 0 }
 0x107   : > { %v332_v19 = vsel %vm327_vm7, %v1715_v17, %v1714_v18  ;;  %v339_v20 = vsel %vm338_vm8, %v1720_v15, %v1719_v16  ;;  %v328_v21 = vsel %vm327_vm7, %v1714_v18, %v1715_v17  ;;  %v342_v22 = vsel %vm338_vm8, %v1719_v16, %v1720_v15  ;;  %v1642_v16 = vld [vmem:[%s2200_s2 + $0x1c] sm:$0xf]  ;;  %v1645_v17 = vld [vmem:[%s2200_s2 + $0x20] sm:$0xf] }
 0x108   : > { %v1728_v23 = vpop.permute.xlu1 %1727  ;;  %v1723_v24 = vpop.permute.xlu0 %1722  ;;  %v362_v26 = vsel %vm1867_vm9, %v332_v19, %v339_v20  ;;  %v361_v28 = vsel %vm359_vm11, %v328_v21, %v342_v22  ;;  %v424_v56 = vsel %vm1871_vm10, %v339_v20, %v332_v19  ;;  %v423_v63 = vsel %vm421_vm12, %v342_v22, %v328_v21 }
 0x109   : > { %v1730_v29 = vunpack.i.h.bf16 %v1728_v23  ;;  %v1729_v30 = vunpack.i.l.bf16 %v1728_v23  ;;  %v1725_v31 = vunpack.i.h.bf16 %v1723_v24  ;;  %v1724_v32 = vunpack.i.l.bf16 %v1723_v24 }
 0x10a   : > { %v431_v34 = vpack.c.bf16 %v362_v26, %v362_v26  ;;  %v430_v36 = vpack.c.bf16 %v361_v28, %v361_v28  ;;  %v768_v60 = vpack.c.bf16 %v424_v56, %v424_v56  ;;  %v767_v4 = vpack.c.bf16 %v423_v63, %v423_v63 }
 0x10b   : > { %v399_v38 = vsel %vm338_vm8, %v1730_v29, %v1729_v30  ;;  %v402_v39 = vsel %vm338_vm8, %v1729_v30, %v1730_v29  ;;  %v389_v41 = vsel %vm327_vm7, %v1724_v32, %v1725_v31  ;;  %v393_v42 = vsel %vm327_vm7, %v1725_v31, %v1724_v32 }
 0x10c   : > { %1623 = vmatprep.subr.msk.bf16.mxu1 %vm440_vm13, %v431_v34  ;;  %v492_v46 = vsel %vm440_vm13, %v430_v36, 0  ;;  %v404_v47 = vsel %vm1867_vm9, %v393_v42, %v399_v38  ;;  %v403_v48 = vsel %vm359_vm11, %v389_v41, %v402_v39  ;;  %v428_v7 = vsel %vm1871_vm10, %v399_v38, %v393_v42 }
 0x10d   : > { %498 = vmatpush1.bf16.msra.mxu1 %v492_v46  ;;  %v541_v51 = vpack.c.bf16 %v404_v47, %v404_v47  ;;  %v540_v52 = vpack.c.bf16 %v403_v48, %v403_v48  ;;  %v773_v3 = vsel %vm440_vm13, %v767_v4, 0  ;;  %v880_v8 = vpack.c.bf16 %v428_v7, %v428_v7 }
 0x10e   : > { %1629 = vmatprep.subr.msk.bf16.mxu1 %vm440_vm13, %v597_v37  ;;  %v427_v11 = vsel %vm421_vm12, %v402_v39, %v389_v41 }
 0x10f   : > { %1626 = vmatprep.subr.msk.bf16.mxu0 %vm440_vm13, %v541_v51  ;;  %v546_v55 = vsel %vm440_vm13, %v540_v52, 0  ;;  %v879_v13 = vpack.c.bf16 %v427_v11, %v427_v11 }
 0x110   : > { %1624 = vmatmul.mubr.msk.bf16.vlgmr.msra.gmra.mrb[0].mxu1 %vm436_vm14, %v429_v50  ;;  %552 = vmatpush1.bf16.msra.mxu0 %v546_v55 }
 0x111   : > { %608 = vmatpush1.bf16.msra.mxu1 %v602_v57  ;;  %1634 = vmatprep.subr.msk.bf16.mxu0 %vm440_vm13, %v1633_v53  ;;  %v885_v15 = vsel %vm440_vm13, %v879_v13, 0 }
 0x112   : > { %1637 = vmatprep.subr.msk.bf16.mxu1 %vm440_vm13, %v712_v58  ;;  %639 = vmatprep.mubr.bf16.mxu1 %v1782_v0 }
 0x113   : > { %1627 = vmatmul.mubr.msk.bf16.vlgmr.msra.gmra.mrb[4].mxu0 %vm436_vm14, %v1625_v1 }
 0x114   : > { %667 = vmatpush1.bf16.msra.mxu0 %v661_v59  ;;  %698 = vmatprep.mubr.bf16.mxu0 %v1782_v0 }
 0x115   : > { %1640 = vmatprep.subr.msk.bf16.mxu0 %vm440_vm13, %v768_v60 }
 0x118   : > { %1630 = vmatmul.mubr.msk.bf16.vlgmr.msra.gmra.mrb[4].mxu1 %vm436_vm14, %v1628_v2 }
 0x119   : > { %723 = vmatpush1.bf16.msra.mxu1 %v717_v6  ;;  %754 = vmatprep.mubr.bf16.mxu1 %v1782_v0 }
 0x11a   : > { %1643 = vmatprep.subr.msk.bf16.mxu1 %vm440_vm13, %v824_v5 }
 0x11b   : > { %1635 = vmatmul.mubr.msk.bf16.vlgmr.msra.gmra.mrb[8].mxu0 %vm436_vm14, %v1631_v62 }
 0x11c   : > { %779 = vmatpush1.bf16.msra.mxu0 %v773_v3  ;;  %810 = vmatprep.mubr.bf16.mxu0 %v1782_v0 }
 0x11d   : > { %1646 = vmatprep.subr.msk.bf16.mxu0 %vm440_vm13, %v880_v8  ;;  %v937_v8 = vpop.permute.xlu0 %936 }
 0x120   : > { %1638 = vmatmul.mubr.msk.bf16.vlgmr.msra.gmra.mrb[8].mxu1 %vm436_vm14, %v1636_v12 }
 0x121   : > { %835 = vmatpush1.bf16.msra.mxu1 %v829_v14  ;;  %866 = vmatprep.mubr.bf16.mxu1 %v1782_v0 }
 0x123   : > { %1641 = vmatmul.mubr.msk.bf16.vlgmr.msra.gmra.mrb[12].mxu0 %vm436_vm14, %v1639_v10 }
 0x124   : > { %891 = vmatpush1.bf16.msra.mxu0 %v885_v15  ;;  %922 = vmatprep.mubr.bf16.mxu0 %v1782_v0 }
 0x128   : > { %1644 = vmatmul.mubr.msk.bf16.vlgmr.msra.gmra.mrb[12].mxu1 %vm436_vm14, %v1642_v16 }
 0x129   : > { %1089 = vmatprep.mubr.bf16.mxu1 %v1782_v0 }
 0x12b   : > { %1647 = vmatmul.mubr.msk.bf16.vlgmr.msra.gmra.mrb[16].mxu0 %vm436_vm14, %v1645_v17 }
 0x12c   : > { %1139 = vmatprep.mubr.bf16.mxu0 %v1782_v0 }
 0x16b   : > { %v481_v18 = vpop.f32.mrb[0].mxu0 }
 0x16c   : > { %v483_v19 = vpop.f32.mrb[1].mxu0 }
 0x16d   : > { %v485_v20 = vpop.f32.mrb[2].mxu0 }
 0x16e   : > { %v486_v21 = vpop.f32.mrb[3].mxu0 }
 0x1e3   : > { %v531_v22 = vpop.f32.mrb[0].mxu1 }
 0x1e4   : > { %v532_v23 = vadd.f32 %v531_v22, %v481_v18  ;;  %v533_v24 = vpop.f32.mrb[1].mxu1 }
 0x1e5   : > { %v534_v26 = vadd.f32 %v533_v24, %v483_v19  ;;  %v535_v28 = vpop.f32.mrb[2].mxu1 }
 0x1e6   : > { %v536_v29 = vpop.f32.mrb[3].mxu1  ;;  %v585_v30 = vpop.f32.mrb[4].mxu0 }
 0x1e7   : > { %v592_v31 = vadd.f32 %v585_v30, %v532_v23  ;;  %v587_v32 = vpop.f32.mrb[5].mxu0 }
 0x1e8   : > { %v593_v34 = vadd.f32 %v587_v32, %v534_v26  ;;  %v589_v36 = vpop.f32.mrb[6].mxu0 }
 0x1e9   : > { %v590_v37 = vpop.f32.mrb[7].mxu0 }
 0x1eb   : > { %v641_v38 = vpop.f32.mrb[4].mxu1 }
 0x1ec   : > { %v648_v39 = vadd.f32 %v641_v38, %v592_v31  ;;  %v643_v41 = vpop.f32.mrb[5].mxu1 }
 0x1ed   : > { %v649_v42 = vadd.f32 %v643_v41, %v593_v34  ;;  %v645_v46 = vpop.f32.mrb[6].mxu1 }
 0x1ee   : > { %v646_v47 = vpop.f32.mrb[7].mxu1  ;;  %v700_v48 = vpop.f32.mrb[8].mxu0 }
 0x1ef   : > { %v707_v49 = vadd.f32 %v700_v48, %v648_v39  ;;  %v702_v50 = vpop.f32.mrb[9].mxu0 }
 0x1f0   : > { %v708_v51 = vadd.f32 %v702_v50, %v649_v42  ;;  %v704_v52 = vpop.f32.mrb[10].mxu0 }
 0x1f1   : > { %v705_v53 = vpop.f32.mrb[11].mxu0 }
 0x1f3   : > { %v756_v54 = vpop.f32.mrb[8].mxu1 }
 0x1f4   : > { %v763_v55 = vadd.f32 %v756_v54, %v707_v49  ;;  %v758_v56 = vpop.f32.mrb[9].mxu1 }
 0x1f5   : > { %v764_v57 = vadd.f32 %v758_v56, %v708_v51  ;;  %v760_v58 = vpop.f32.mrb[10].mxu1 }
 0x1f6   : > { %v761_v1 = vpop.f32.mrb[11].mxu1  ;;  %v812_v59 = vpop.f32.mrb[12].mxu0 }
 0x1f7   : > { %v819_v60 = vadd.f32 %v812_v59, %v763_v55  ;;  %v814_v61 = vpop.f32.mrb[13].mxu0 }
 0x1f8   : > { %v820_v63 = vadd.f32 %v814_v61, %v764_v57  ;;  %v816_v2 = vpop.f32.mrb[14].mxu0 }
 0x1f9   : > { %v817_v4 = vpop.f32.mrb[15].mxu0  ;;  %v1540_v2 = vld [vmem:[%s2203_s5] sm:$0xff] }
 0x1fb   : > { %v868_v5 = vpop.f32.mrb[12].mxu1 }
 0x1fc   : > { %v875_v6 = vadd.f32 %v868_v5, %v819_v60  ;;  %v870_v62 = vpop.f32.mrb[13].mxu1 }
 0x1fd   : > { %v876_v7 = vadd.f32 %v870_v62, %v820_v63  ;;  %v872_v3 = vpop.f32.mrb[14].mxu1  ;;  %v1648_v63 = vld [vmem:[%s2202_s4 + $0x4] sm:$0xf] }
 0x1fe   : > { %v873_v9 = vpop.f32.mrb[15].mxu1  ;;  %v924_v11 = vpop.f32.mrb[16].mxu0 }
 0x1ff   : > { %v931_v12 = vadd.f32 %v924_v11, %v875_v6  ;;  %v926_v13 = vpop.f32.mrb[17].mxu0 }
 0x200   : > { %v932_v14 = vadd.f32 %v926_v13, %v876_v7  ;;  %v928_v10 = vpop.f32.mrb[18].mxu0 }
 0x201   : > { %v939_v15 = vadd.f32 %v937_v8, %v931_v12  ;;  %v929_v16 = vpop.f32.mrb[19].mxu0 }
 0x202   : > { %v940_v17 = vadd.f32 %v937_v8, %v932_v14 }
 0x203   : > { %vm941_vm15 = vcmp.ge.f32.partialorder %v939_v15, 0.0  ;;  %v943_v18 = vmul.f32 0.2, %v939_v15 }
 0x204   : > { %vm942_vm0 = vcmp.ge.f32.partialorder %v940_v17, 0.0  ;;  %v944_v19 = vmul.f32 0.2, %v940_v17 }
 0x205   : > { %v2033_v20 = vsel %vm941_vm15, %v939_v15, %v943_v18 }
 0x206   : > { %v2035_v21 = vsel %vm942_vm0, %v940_v17, %v944_v19  ;;  %v1262_v33 = vpack.c.bf16 %v2033_v20, %v2033_v20 }
 0x207   : > { %v1742_v22 = vpack.i.bf16 %v2035_v21, %v2033_v20  ;;  %v1737_v23 = vpack.i.bf16 %v2033_v20, %v2035_v21  ;;  %v1263_v43 = vpack.c.bf16 %v2035_v21, %v2035_v21 }
 0x208   : > { %v1268_v20 = vsel %vm440_vm13, %v1262_v33, 0 }
 0x209   : > { %1743 = vrot.lane.b32.xlu0 %v1742_v22, %s1784_s28  ;;  %1733 = vrot.lane.b32.xlu1 %v1742_v22, %s1783_s27 }
 0x20d   : > { %1738 = vrot.lane.b32.xlu1 %v1737_v23, %s1785_s29  ;;  %s251_s29 = scalar_lea.vmem %s2204_s6, %s1677_s9 }
 0x211   : > { %1748 = vrot.lane.b32.xlu1 %v1737_v23, %s1786_s30 }
 0x27b   : > { %v1734_v24 = vpop.permute.xlu1 %1733  ;;  %v1744_v26 = vpop.permute.xlu0 %1743 }
 0x27c   : > { %v1736_v28 = vunpack.i.h.bf16 %v1734_v24  ;;  %v1735_v29 = vunpack.i.l.bf16 %v1734_v24  ;;  %v1746_v34 = vunpack.i.h.bf16 %v1744_v26  ;;  %v1745_v36 = vunpack.i.l.bf16 %v1744_v26 }
 0x27e   : > { %v953_v37 = vsel %vm264_vm1, %v1735_v29, %v1736_v28  ;;  %v957_v38 = vsel %vm264_vm1, %v1736_v28, %v1735_v29  ;;  %v997_v25 = vsel %vm327_vm7, %v1745_v36, %v1746_v34  ;;  %v1001_v54 = vsel %vm327_vm7, %v1746_v34, %v1745_v36  ;;  %v1041_v34 = vld [vmem:[%s2202_s4] sm:$0xf] }
 0x27f   : > { %v1739_v30 = vpop.permute.xlu1 %1738 }
 0x280   : > { %v1741_v31 = vunpack.i.h.bf16 %v1739_v30  ;;  %v1740_v32 = vunpack.i.l.bf16 %v1739_v30 }
 0x282   : > { %v963_v39 = vsel %vm275_vm2, %v1741_v31, %v1740_v32  ;;  %v966_v41 = vsel %vm275_vm2, %v1740_v32, %v1741_v31 }
 0x283   : > { %v1749_v42 = vpop.permute.xlu1 %1748  ;;  %v2051_v46 = vsel %vm297_vm3, %v953_v37, %v966_v41  ;;  %v968_v47 = vsel %vm1858_vm4, %v957_v38, %v963_v39  ;;  %v2057_v48 = vsel %vm317_vm5, %v966_v41, %v953_v37  ;;  %v2061_v49 = vsel %vm1863_vm6, %v963_v39, %v957_v38 }
 0x284   : > { %v1751_v50 = vunpack.i.h.bf16 %v1749_v42  ;;  %v1750_v51 = vunpack.i.l.bf16 %v1749_v42  ;;  %v1757_v52 = vpack.i.bf16 %v2051_v46, %v968_v47  ;;  %v1752_v53 = vpack.i.bf16 %v968_v47, %v2051_v46 }
 0x285   : > { %v1767_v55 = vpack.i.bf16 %v2057_v48, %v2061_v49  ;;  %v1762_v60 = vpack.i.bf16 %v2061_v49, %v2057_v48  ;;  %v1207_v24 = vpack.c.bf16 %v968_v47, %v968_v47  ;;  %v1206_v30 = vpack.c.bf16 %v2051_v46, %v2051_v46  ;;  %v1653_v47 = vld [vmem:[%s2202_s4 + $0x8] sm:$0xf] }
 0x286   : > { %v1007_v35 = vsel %vm338_vm8, %v1751_v50, %v1750_v51  ;;  %v1010_v27 = vsel %vm338_vm8, %v1750_v51, %v1751_v50  ;;  %1758 = vrot.lane.b32.xlu1 %v1757_v52, %s1786_s30  ;;  %1753 = vrot.lane.b32.xlu0 %v1752_v53, %s1784_s28  ;;  %v1319_v42 = vpack.c.bf16 %v2061_v49, %v2061_v49  ;;  %v1656_v51 = vld [vmem:[%s2202_s4 + $0xc] sm:$0xf] }
 0x287   : > { %v1012_v40 = vsel %vm1867_vm9, %v1001_v54, %v1007_v35  ;;  %v1011_v56 = vsel %vm359_vm11, %v997_v25, %v1010_v27  ;;  %v2079_v1 = vsel %vm1871_vm10, %v1007_v35, %v1001_v54  ;;  %v2083_v59 = vsel %vm421_vm12, %v1010_v27, %v997_v25  ;;  %v1659_v54 = vld [vmem:[%s2202_s4 + $0x10] sm:$0xf] }
 0x288   : > { %v1047_v57 = vpack.c.bf16 %v1012_v40, %v1012_v40  ;;  %v1046_v58 = vpack.c.bf16 %v1011_v56, %v1011_v56  ;;  %v1212_v41 = vsel %vm440_vm13, %v1206_v30, 0  ;;  %v1318_v21 = vpack.c.bf16 %v2057_v48, %v2057_v48  ;;  %v1662_v56 = vld [vmem:[%s2202_s4 + $0x14] sm:$0xf] }
 0x289   : > { %v1431_v53 = vpack.c.bf16 %v2079_v1, %v2079_v1  ;;  %v1430_v27 = vpack.c.bf16 %v2083_v59, %v2083_v59  ;;  %v1665_v1 = vld [vmem:[%s2202_s4 + $0x18] sm:$0xf] }
 0x28a   : > { %1649 = vmatprep.subr.msk.bf16.mxu1 %vm440_vm13, %v1047_v57  ;;  %1768 = vrot.lane.b32.xlu1 %v1767_v55, %s1786_s30  ;;  %v1052_v61 = vsel %vm440_vm13, %v1046_v58, 0  ;;  %v1324_v48 = vsel %vm440_vm13, %v1318_v21, 0 }
 0x28b   : > { %1763 = vrot.lane.b32.xlu0 %v1762_v60, %s1784_s28  ;;  %1058 = vmatpush1.bf16.msra.mxu1 %v1052_v61  ;;  %v1436_v44 = vsel %vm440_vm13, %v1430_v27, 0  ;;  %v1671_v60 = vld [vmem:[%s2202_s4 + $0x20] sm:$0xf] }
 0x28e   : > { %1650 = vmatmul.mubr.msk.bf16.vlgmr.msra.gmra.mrb[16].mxu1 %vm436_vm14, %v1648_v63 }
 0x28f   : > { %1543 = vperm.xlu0 %1731, %v1540_v2   ;;  %1193 = vmatprep.mubr.bf16.mxu1 %v1782_v0 }
 0x2f8   : > { %v1759_v4 = vpop.permute.xlu1 %1758  ;;  %v1754_v5 = vpop.permute.xlu0 %1753 }
 0x2f9   : > { %v1761_v6 = vunpack.i.h.bf16 %v1759_v4  ;;  %v1760_v62 = vunpack.i.l.bf16 %v1759_v4  ;;  %v1756_v7 = vunpack.i.h.bf16 %v1754_v5  ;;  %v1755_v3 = vunpack.i.l.bf16 %v1754_v5 }
 0x2fb   : > { %v987_v8 = vsel %vm338_vm8, %v1761_v6, %v1760_v62  ;;  %v990_v9 = vsel %vm338_vm8, %v1760_v62, %v1761_v6  ;;  %v977_v11 = vsel %vm327_vm7, %v1755_v3, %v1756_v7  ;;  %v981_v12 = vsel %vm327_vm7, %v1756_v7, %v1755_v3 }
 0x2fc   : > { %v1769_v13 = vpop.permute.xlu1 %1768  ;;  %v992_v14 = vsel %vm1867_vm9, %v981_v12, %v987_v8  ;;  %v991_v10 = vsel %vm359_vm11, %v977_v11, %v990_v9  ;;  %v1036_v49 = vsel %vm1871_vm10, %v987_v8, %v981_v12  ;;  %v1035_v52 = vsel %vm421_vm12, %v990_v9, %v977_v11 }
 0x2fd   : > { %v1771_v15 = vunpack.i.h.bf16 %v1769_v13  ;;  %v1770_v16 = vunpack.i.l.bf16 %v1769_v13  ;;  %v1764_v17 = vpop.permute.xlu0 %1763  ;;  %v1043_v18 = vpack.c.bf16 %v992_v14, %v992_v14  ;;  %v1042_v19 = vpack.c.bf16 %v991_v10, %v991_v10 }
 0x2fe   : > { %v1766_v22 = vunpack.i.h.bf16 %v1764_v17  ;;  %v1765_v23 = vunpack.i.l.bf16 %v1764_v17  ;;  %v1375_v50 = vpack.c.bf16 %v1036_v49, %v1036_v49  ;;  %v1374_v25 = vpack.c.bf16 %v1035_v52, %v1035_v52 }
 0x2ff   : > { %v1029_v26 = vsel %vm338_vm8, %v1771_v15, %v1770_v16  ;;  %v1032_v28 = vsel %vm338_vm8, %v1770_v16, %v1771_v15  ;;  %1651 = vmatprep.subr.msk.bf16.mxu0 %vm440_vm13, %v1043_v18  ;;  %v1102_v29 = vsel %vm440_vm13, %v1042_v19, 0 }
 0x300   : > { %v1019_v31 = vsel %vm327_vm7, %v1765_v23, %v1766_v22  ;;  %v1023_v32 = vsel %vm327_vm7, %v1766_v22, %v1765_v23  ;;  %1108 = vmatpush1.bf16.msra.mxu0 %v1102_v29  ;;  %v1380_v40 = vsel %vm440_vm13, %v1374_v25, 0 }
 0x301   : > { %1657 = vmatprep.subr.msk.bf16.mxu0 %vm440_vm13, %v1207_v24  ;;  %v1034_v36 = vsel %vm1867_vm9, %v1023_v32, %v1029_v26  ;;  %v1033_v37 = vsel %vm359_vm11, %v1019_v31, %v1032_v28  ;;  %v1040_v35 = vsel %vm1871_vm10, %v1029_v26, %v1023_v32  ;;  %v1039_v57 = vsel %vm421_vm12, %v1032_v28, %v1019_v31 }
 0x302   : > { %v1151_v38 = vpack.c.bf16 %v1034_v36, %v1034_v36  ;;  %v1150_v39 = vpack.c.bf16 %v1033_v37, %v1033_v37  ;;  %v1487_v55 = vpack.c.bf16 %v1040_v35, %v1040_v35  ;;  %v1486_v58 = vpack.c.bf16 %v1039_v57, %v1039_v57 }
 0x303   : > { %1652 = vmatmul.mubr.msk.bf16.vlgmr.msra.gmra.mrb[20].mxu0 %vm436_vm14, %v1041_v34 }
 0x304   : > { %1654 = vmatprep.subr.msk.bf16.mxu1 %vm440_vm13, %v1151_v38  ;;  %v1156_v46 = vsel %vm440_vm13, %v1150_v39, 0  ;;  %1218 = vmatpush1.bf16.msra.mxu0 %v1212_v41  ;;  %v1492_v59 = vsel %vm440_vm13, %v1486_v58, 0 }
 0x305   : > { %1162 = vmatpush1.bf16.msra.mxu1 %v1156_v46  ;;  %1663 = vmatprep.subr.msk.bf16.mxu0 %vm440_vm13, %v1319_v42 }
 0x306   : > { %1660 = vmatprep.subr.msk.bf16.mxu1 %vm440_vm13, %v1263_v43  ;;  %1249 = vmatprep.mubr.bf16.mxu0 %v1782_v0 }
 0x308   : > { %1655 = vmatmul.mubr.msk.bf16.vlgmr.msra.gmra.mrb[20].mxu1 %vm436_vm14, %v1653_v47 }
 0x309   : > { %1274 = vmatpush1.bf16.msra.mxu1 %v1268_v20  ;;  %1305 = vmatprep.mubr.bf16.mxu1 %v1782_v0 }
 0x30a   : > { %1666 = vmatprep.subr.msk.bf16.mxu1 %vm440_vm13, %v1375_v50 }
 0x30b   : > { %1658 = vmatmul.mubr.msk.bf16.vlgmr.msra.gmra.mrb[24].mxu0 %vm436_vm14, %v1656_v51 }
 0x30c   : > { %1330 = vmatpush1.bf16.msra.mxu0 %v1324_v48  ;;  %1361 = vmatprep.mubr.bf16.mxu0 %v1782_v0 }
 0x30d   : > { %1669 = vmatprep.subr.msk.bf16.mxu0 %vm440_vm13, %v1431_v53 }
 0x30e   : > { %v1544_v53 = vpop.permute.xlu0 %1543 }
 0x310   : > { %1661 = vmatmul.mubr.msk.bf16.vlgmr.msra.gmra.mrb[24].mxu1 %vm436_vm14, %v1659_v54 }
 0x311   : > { %1386 = vmatpush1.bf16.msra.mxu1 %v1380_v40  ;;  %1417 = vmatprep.mubr.bf16.mxu1 %v1782_v0 }
 0x312   : > { %1672 = vmatprep.subr.msk.bf16.mxu1 %vm440_vm13, %v1487_v55 }
 0x313   : > { %1664 = vmatmul.mubr.msk.bf16.vlgmr.msra.gmra.mrb[28].mxu0 %vm436_vm14, %v1662_v56 }
 0x314   : > { %1442 = vmatpush1.bf16.msra.mxu0 %v1436_v44  ;;  %1473 = vmatprep.mubr.bf16.mxu0 %v1782_v0 }
 0x318   : > { %1667 = vmatmul.mubr.msk.bf16.vlgmr.msra.gmra.mrb[28].mxu1 %vm436_vm14, %v1665_v1 }
 0x319   : > { %1498 = vmatpush1.bf16.msra.mxu1 %v1492_v59  ;;  %1529 = vmatprep.mubr.bf16.mxu1 %v1782_v0 }
 0x31b   : > { %1670 = vmatmul.mubr.msk.bf16.vlgmr.msra.gmra.mrb[32].mxu0 %vm436_vm14, %v1668_v45 }
 0x320   : > { %1673 = vmatmul.mubr.msk.bf16.vlgmr.msra.gmra.mrb[32].mxu1 %vm436_vm14, %v1671_v60 }
 0x361   : > { %v1091_v61 = vpop.f32.mrb[16].mxu1 }
 0x362   : > { %v1093_v63 = vpop.f32.mrb[17].mxu1 }
 0x363   : > { %v1095_v2 = vpop.f32.mrb[18].mxu1 }
 0x364   : > { %v1096_v4 = vpop.f32.mrb[19].mxu1 }
 0x3d6   : > { %v1141_v5 = vpop.f32.mrb[20].mxu0 }
 0x3d7   : > { %v1142_v6 = vadd.f32 %v1141_v5, %v1091_v61  ;;  %v1143_v62 = vpop.f32.mrb[21].mxu0 }
 0x3d8   : > { %v1144_v7 = vadd.f32 %v1143_v62, %v1093_v63  ;;  %v1145_v3 = vpop.f32.mrb[22].mxu0 }
 0x3d9   : > { %v1146_v8 = vpop.f32.mrb[23].mxu0 }
 0x3db   : > { %v1195_v9 = vpop.f32.mrb[20].mxu1 }
 0x3dc   : > { %v1202_v0 = vadd.f32 %v1195_v9, %v1142_v6  ;;  %v1197_v11 = vpop.f32.mrb[21].mxu1 }
 0x3dd   : > { %v1203_v12 = vadd.f32 %v1197_v11, %v1144_v7  ;;  %v1199_v13 = vpop.f32.mrb[22].mxu1 }
 0x3de   : > { %v1251_v14 = vpop.f32.mrb[24].mxu0  ;;  %v1200_v10 = vpop.f32.mrb[23].mxu1 }
 0x3df   : > { %v1258_v15 = vadd.f32 %v1251_v14, %v1202_v0  ;;  %v1253_v16 = vpop.f32.mrb[25].mxu0 }
 0x3e0   : > { %v1259_v17 = vadd.f32 %v1253_v16, %v1203_v12  ;;  %v1255_v18 = vpop.f32.mrb[26].mxu0 }
 0x3e1   : > { %v1256_v19 = vpop.f32.mrb[27].mxu0 }
 0x3e3   : > { %v1307_v22 = vpop.f32.mrb[24].mxu1 }
 0x3e4   : > { %v1314_v23 = vadd.f32 %v1307_v22, %v1258_v15  ;;  %v1309_v24 = vpop.f32.mrb[25].mxu1 }
 0x3e5   : > { %v1315_v26 = vadd.f32 %v1309_v24, %v1259_v17  ;;  %v1311_v28 = vpop.f32.mrb[26].mxu1 }
 0x3e6   : > { %v1363_v29 = vpop.f32.mrb[28].mxu0  ;;  %v1312_v30 = vpop.f32.mrb[27].mxu1 }
 0x3e7   : > { %v1370_v31 = vadd.f32 %v1363_v29, %v1314_v23  ;;  %v1365_v32 = vpop.f32.mrb[29].mxu0 }
 0x3e8   : > { %v1371_v34 = vadd.f32 %v1365_v32, %v1315_v26  ;;  %v1367_v36 = vpop.f32.mrb[30].mxu0 }
 0x3e9   : > { %v1368_v37 = vpop.f32.mrb[31].mxu0 }
 0x3eb   : > { %v1419_v38 = vpop.f32.mrb[28].mxu1 }
 0x3ec   : > { %v1426_v39 = vadd.f32 %v1419_v38, %v1370_v31  ;;  %v1421_v41 = vpop.f32.mrb[29].mxu1 }
 0x3ed   : > { %v1427_v42 = vadd.f32 %v1421_v41, %v1371_v34  ;;  %v1423_v46 = vpop.f32.mrb[30].mxu1 }
 0x3ee   : > { %v1475_v43 = vpop.f32.mrb[32].mxu0  ;;  %v1424_v33 = vpop.f32.mrb[31].mxu1 }
 0x3ef   : > { %v1482_v47 = vadd.f32 %v1475_v43, %v1426_v39  ;;  %v1477_v49 = vpop.f32.mrb[33].mxu0 }
 0x3f0   : > { %v1483_v21 = vadd.f32 %v1477_v49, %v1427_v42  ;;  %v1479_v20 = vpop.f32.mrb[34].mxu0 }
 0x3f1   : > { %v1480_v50 = vpop.f32.mrb[35].mxu0 }
 0x3f3   : > { %v1531_v51 = vpop.f32.mrb[32].mxu1 }
 0x3f4   : > { %v1538_v52 = vadd.f32 %v1531_v51, %v1482_v47  ;;  %v1533_v48 = vpop.f32.mrb[33].mxu1 }
 0x3f5   : > { %v1539_v25 = vadd.f32 %v1533_v48, %v1483_v21  ;;  %v1535_v54 = vpop.f32.mrb[34].mxu1 }
 0x3f6   : > { %v1546_v35 = vadd.f32 %v1544_v53, %v1538_v52  ;;  %v1536_v27 = vpop.f32.mrb[35].mxu1 }
 0x3f7   : > { %v1547_v40 = vadd.f32 %v1544_v53, %v1539_v25 }
 0x3f8   : > { %vm1548_vm1 = vcmp.ge.f32.partialorder %v1546_v35, 0.0  ;;  %v1550_v55 = vmul.f32 0.2, %v1546_v35 }
 0x3f9   : > { %vm1549_vm2 = vcmp.ge.f32.partialorder %v1547_v40, 0.0  ;;  %v1551_v56 = vmul.f32 0.2, %v1547_v40 }
 0x3fa   : > { %v1552_v57 = vsel %vm1548_vm1, %v1546_v35, %v1550_v55 }
 0x3fb   : > { %1554 = vst [vmem:[%s251_s29] sm:$0xff] %v1552_v57  ;;  %v1553_v44 = vsel %vm1549_vm2, %v1547_v40, %v1551_v56 }
 0x3fc   : > { %1555 = vst [vmem:[%s251_s29 + $0x8] sm:$0xff] %v1553_v44 }
 0x3fd PF: > { %s16_s21 = sadd.s32 1, %s1780_s21  }
 0x3fe   : > { %p13_p4 = scmp.ge.s32.totalorder %s16_s21, 4  }
 0x400   :  { %15 = sbr.rel (!%p13_p4) target bundleno = 1 (0x1), region = 90 }

</bundles_post_ra>
